<compile_context>
chip_gen: v5e
topology: v5e:2x2
jax: 0.10.0
libtpu: 0.0.40
codegen_flags: <defaults>
</compile_context>

<pallas_src>
import jax
import jax.numpy as jnp
from jax.experimental import pallas as pl
from jax.experimental.pallas import tpu as pltpu

LANE = 128
COL0 = 8   # 8-aligned sublane (width) offset of the image interior inside the haloed scratch


def _round_up(x, m):
    return (x + m - 1) // m * m


def fused_double_conv_kernel(xp_ref, w1_ref, b1_ref, w2_ref, b2_ref, o_ref,
                             midpad_ref, acc_ref):
    """One image per grid step.

    xp_ref:     (1, H, W, K1p)        bf16   im2col patches of conv1 (K1p = 9*Cin padded)
    w1_ref:     (K1p, Cmid_p)         bf16
    b1_ref:     (1, Cmid_p)           f32
    w2_ref:     (9, Cmid_p, Cout_p)   bf16   tap-major (dh*3+dw) conv2 weights
    b2_ref:     (1, Cout_p)           f32
    o_ref:      (1, H, W, Cout_p)     bf16
    midpad_ref: VMEM (H+2, Wp, Cmid_p) f32   zero-haloed conv1 activation (interior at COL0)
    acc_ref:    VMEM (H*W, Cout_p)     f32   conv2 accumulator
    """
    H = o_ref.shape[1]
    W = o_ref.shape[2]
    Cout_p = o_ref.shape[3]
    Wp = midpad_ref.shape[1]
    Cmid_p = midpad_ref.shape[2]
    K1p = xp_ref.shape[3]

    f32 = jnp.float32

    # ---- zero ONLY the 1-pixel halo of the conv1 scratch (all stores 8-aligned, O(perimeter)).
    #      Done every step so it is correct no matter how the grid is sharded across cores.
    midpad_ref[0:1, :, :] = jnp.zeros((1, Wp, Cmid_p), f32)                     # top halo row
    midpad_ref[H + 1:H + 2, :, :] = jnp.zeros((1, Wp, Cmid_p), f32)             # bottom halo row
    midpad_ref[1:H + 1, 0:COL0, :] = jnp.zeros((H, COL0, Cmid_p), f32)          # left halo cols
    midpad_ref[1:H + 1, COL0 + W:Wp, :] = jnp.zeros((H, Wp - (COL0 + W), Cmid_p), f32)  # right

    # ---- conv1: single im2col matmul (bf16 MXU operands, f32 accumulate) + bias + ReLU ----
    patches = xp_ref[0, :, :, :].reshape(H * W, K1p)            # layout-preserving (W % 8 == 0)
    a1 = jnp.dot(patches, w1_ref[...], preferred_element_type=jnp.float32)
    a1 = jnp.maximum(a1 + b1_ref[...], 0.0)                     # (H*W, Cmid_p) f32

    # f32 intermediate stays in VMEM; interior store is sublane-aligned (offset COL0=8).
    midpad_ref[1:H + 1, COL0:COL0 + W, :] = a1.reshape(H, W, Cmid_p)

    # ---- conv2: 9 tap matmuls.  dh shift = leading-axis slice (free); dw shift = one
    #      pltpu.roll per dw over the flattened scratch, so slices/reshapes are layout-
    #      preserving and feed the MXU without relayout copies.
    n_flat = (H + 2) * Wp
    mid_flat = midpad_ref[...].reshape(n_flat, Cmid_p)
    shifted = {}
    for dw in (0, 2):
        start = COL0 - 1 + dw                                   # 7 or 9 (never wraps: < Wp)
        # rolled[r] = mid_flat[r + start]  (jnp.roll semantics, positive shift)
        shifted[dw] = pltpu.roll(mid_flat, n_flat - start, axis=0).reshape(H + 2, Wp, Cmid_p)

    tap = 0
    for dh in range(3):
        for dw in range(3):
            if dw == 1:
                # middle tap starts at COL0 (8-aligned): direct aligned slice, no roll needed
                patch = midpad_ref[dh:dh + H, COL0:COL0 + W, :]
            else:
                patch = shifted[dw][dh:dh + H, 0:W, :]
            lhs = patch.reshape(H * W, Cmid_p).astype(jnp.bfloat16)
            contrib = jnp.dot(lhs, w2_ref[dh * 3 + dw],
                              preferred_element_type=jnp.float32)
            if tap == 0:
                acc_ref[...] = contrib            # first tap initializes (no zero fill needed)
            else:
                acc_ref[...] += contrib           # in-place f32 accumulate (MRB-friendly)
            tap += 1

    out2 = jnp.maximum(acc_ref[...] + b2_ref[...], 0.0)
    o_ref[0, :, :, :] = out2.reshape(H, W, Cout_p).astype(o_ref.dtype)


def double_conv_nhwc(x, w1, b1, w2, b2):
    """Fused DoubleConv in NHWC.  x: (N,H,W,Cin) f32; w: HWIO (3,3,Ci,Co); b: (Co,).

    Returns the channel-padded bf16 NHWC result (N, H, W, Cout_p); the caller slices /
    transposes / casts once at the module boundary.
    """
    N, H, W, Cin = x.shape
    assert w1.shape[:3] == (3, 3, Cin)
    Cmid = w1.shape[-1]
    Cout = w2.shape[-1]
    assert w2.shape == (3, 3, Cmid, Cout)
    # TODO(synk): pad W (and slice after) to support widths that are not multiples of 8.
    assert W % 8 == 0, "kernel fast path assumes W % 8 == 0"

    K1 = 9 * Cin
    K1p = _round_up(K1, LANE)
    Cmid_p = _round_up(Cmid, LANE)
    Cout_p = _round_up(Cout, LANE)
    Wp = _round_up(COL0 + W + 1, 8)          # haloed scratch width (interior at cols [COL0, COL0+W))

    # ---- conv1 im2col in the wrapper (XLA): tap-major (dh, dw, cin) channel packing ----
    xsp = jnp.pad(x, ((0, 0), (1, 1), (1, 1), (0, 0)))
    patches = jnp.concatenate(
        [xsp[:, dh:dh + H, dw:dw + W, :] for dh in range(3) for dw in range(3)], axis=-1)
    patches = jnp.pad(patches, ((0, 0), (0, 0), (0, 0), (0, K1p - K1))).astype(jnp.bfloat16)

    # Weights / biases: lane-pad and cast MXU operands to bf16 (padded entries are zero -> exact).
    w1f = jnp.pad(w1.reshape(K1, Cmid),
                  ((0, K1p - K1), (0, Cmid_p - Cmid))).astype(jnp.bfloat16)
    w2f = jnp.pad(w2.reshape(9, Cmid, Cout),
                  ((0, 0), (0, Cmid_p - Cmid), (0, Cout_p - Cout))).astype(jnp.bfloat16)
    b1p = jnp.pad(b1, (0, Cmid_p - Cmid)).astype(jnp.float32).reshape(1, Cmid_p)
    b2p = jnp.pad(b2, (0, Cout_p - Cout)).astype(jnp.float32).reshape(1, Cout_p)

    out = pl.pallas_call(
        fused_double_conv_kernel,
        out_shape=jax.ShapeDtypeStruct((N, H, W, Cout_p), jnp.bfloat16),
        grid=(N,),
        in_specs=[
            pl.BlockSpec((1, H, W, K1p), lambda n: (n, 0, 0, 0)),
            pl.BlockSpec((K1p, Cmid_p), lambda n: (0, 0)),
            pl.BlockSpec((1, Cmid_p), lambda n: (0, 0)),
            pl.BlockSpec((9, Cmid_p, Cout_p), lambda n: (0, 0, 0)),
            pl.BlockSpec((1, Cout_p), lambda n: (0, 0)),
        ],
        out_specs=pl.BlockSpec((1, H, W, Cout_p), lambda n: (n, 0, 0, 0)),
        scratch_shapes=[
            pltpu.VMEM((H + 2, Wp, Cmid_p), jnp.float32),   # haloed f32 conv1 activation
            pltpu.VMEM((H * W, Cout_p), jnp.float32),       # conv2 f32 accumulator
        ],
        compiler_params=pltpu.CompilerParams(
            dimension_semantics=("parallel",),
            # Comfortable on all generations at this working set (~1.5 MiB); re-tune per
            # generation once spatial row tiles grow (<= ~48 MiB on v7x).
            vmem_limit_bytes=32 * 1024 * 1024,
        ),
    )(patches, w1f, b1p, w2f, b2p)
    return out


@jax.jit
def double_conv(x_nchw, w1, b1, w2, b2):
    """DoubleConv forward matching the PyTorch module. (N,Cin,H,W) -> (N,Cout,H,W)."""
    Cout = w2.shape[-1]
    x = jnp.transpose(x_nchw, (0, 2, 3, 1))          # NCHW -> NHWC, once at the boundary
    y = double_conv_nhwc(x, w1, b1, w2, b2)          # (N,H,W,Cout_p) bf16
    # slice + cast + transpose fuse into the single layout pass the NCHW interface needs anyway
    y = y[..., :Cout].astype(jnp.float32)
    return jnp.transpose(y, (0, 3, 1, 2))            # NHWC -> NCHW


def _ref_double_conv_f32(x_nchw, w1, b1, w2, b2):
    """Exact f32 module semantics (lax conv)."""
    x = jnp.transpose(x_nchw, (0, 2, 3, 1))
    dn = ('NHWC', 'HWIO', 'NHWC')
    y = jax.lax.conv_general_dilated(x, w1, (1, 1), 'SAME', dimension_numbers=dn)
    y = jnp.maximum(y + b1, 0.0)
    y = jax.lax.conv_general_dilated(y, w2, (1, 1), 'SAME', dimension_numbers=dn)
    y = jnp.maximum(y + b2, 0.0)
    return jnp.transpose(y, (0, 3, 1, 2))


def _ref_double_conv_mixed(x_nchw, w1, b1, w2, b2):
    """Same precision recipe as the kernel: bf16 MXU operands, f32 accumulation,
    f32 intermediate activation, bf16 final output."""
    x = jnp.transpose(x_nchw, (0, 2, 3, 1))
    dn = ('NHWC', 'HWIO', 'NHWC')
    y = jax.lax.conv_general_dilated(x.astype(jnp.bfloat16), w1.astype(jnp.bfloat16),
                                     (1, 1), 'SAME', dimension_numbers=dn,
                                     preferred_element_type=jnp.float32)
    y = jnp.maximum(y + b1, 0.0)                                   # f32 intermediate
    y = jax.lax.conv_general_dilated(y.astype(jnp.bfloat16), w2.astype(jnp.bfloat16),
                                     (1, 1), 'SAME', dimension_numbers=dn,
                                     preferred_element_type=jnp.float32)
    y = jnp.maximum(y + b2, 0.0).astype(jnp.bfloat16).astype(jnp.float32)
    return jnp.transpose(y, (0, 3, 1, 2))


if __name__ == "__main__":
    N, Cin, Cout, H, W = 2, 4, 8, 16, 16

    key = jax.random.PRNGKey(0)
    kx, kw1, kb1, kw2, kb2 = jax.random.split(key, 5)

    # HWIO weights (equivalent to nn.Conv2d's OIHW weight transposed to (2, 3, 1, 0)).
    x = jax.random.normal(kx, (N, Cin, H, W), dtype=jnp.float32)
    w1 = jax.random.normal(kw1, (3, 3, Cin, Cout), dtype=jnp.float32) * 0.1
    b1 = jax.random.normal(kb1, (Cout,), dtype=jnp.float32) * 0.1
    w2 = jax.random.normal(kw2, (3, 3, Cout, Cout), dtype=jnp.float32) * 0.1
    b2 = jax.random.normal(kb2, (Cout,), dtype=jnp.float32) * 0.1

    out = jax.block_until_ready(double_conv(x, w1, b1, w2, b2))
    assert out.shape == (N, Cout, H, W)

    # Tight check vs. a reference using the same bf16-operand / f32-accumulate recipe.
    ref_m = _ref_double_conv_mixed(x, w1, b1, w2, b2)
    err_m = float(jnp.max(jnp.abs(out - ref_m)))
    assert jnp.allclose(out, ref_m, atol=2e-2, rtol=2e-2), err_m

    # Loose check vs. exact f32 module semantics (bf16 MXU operands loosen tolerance).
    ref_f = _ref_double_conv_f32(x, w1, b1, w2, b2)
    err_f = float(jnp.max(jnp.abs(out - ref_f)))
    assert jnp.allclose(out, ref_f, atol=5e-2, rtol=5e-2), err_f

    print("KERNEL_OK")
</pallas_src>

<mosaic_0001>
module attributes {stable_mosaic.version = 11 : i64} {
  func.func @fused_double_conv_kernel(%arg0: i32, %arg1: memref<1x16x16x128xbf16, #tpu.memory_space<vmem>>, %arg2: memref<128x128xbf16, #tpu.memory_space<vmem>>, %arg3: memref<1x128xf32, #tpu.memory_space<vmem>>, %arg4: memref<9x128x128xbf16, #tpu.memory_space<vmem>>, %arg5: memref<1x128xf32, #tpu.memory_space<vmem>>, %arg6: memref<1x16x16x128xbf16, #tpu.memory_space<vmem>>, %arg7: memref<18x32x128xf32, #tpu.memory_space<vmem>>, %arg8: memref<256x128xf32, #tpu.memory_space<vmem>>) attributes {dimension_semantics = [#tpu.dimension_semantics<parallel>], iteration_bounds = array<i64: 2>, scalar_prefetch = 0 : i64, scratch_operands = 2 : i64, tpu.core_type = #tpu.core_type<tc>, window_params = [{transform_indices = @transform_0, window_bounds = array<i64: 1, 16, 16, 128>}, {pipeline_mode = #tpu.pipeline_mode<synchronous>, transform_indices = @transform_1, window_bounds = array<i64: 128, 128>}, {pipeline_mode = #tpu.pipeline_mode<synchronous>, transform_indices = @transform_2, window_bounds = array<i64: 1, 128>}, {pipeline_mode = #tpu.pipeline_mode<synchronous>, transform_indices = @transform_3, window_bounds = array<i64: 9, 128, 128>}, {pipeline_mode = #tpu.pipeline_mode<synchronous>, transform_indices = @transform_4, window_bounds = array<i64: 1, 128>}, {transform_indices = @transform_5, window_bounds = array<i64: 1, 16, 16, 128>}]} {
    %cst = arith.constant 0.000000e+00 : f32
    %0 = vector.broadcast %cst : f32 to vector<1x32x128xf32>
    %c0 = arith.constant 0 : index
    %c0_0 = arith.constant 0 : index
    %c0_1 = arith.constant 0 : index
    %1 = vector.load %arg7[%c0, %c0_0, %c0_1] : memref<18x32x128xf32, #tpu.memory_space<vmem>>, vector<1x32x128xf32>
    tpu.vector_store %arg7[%c0, %c0_0, %c0_1], %0 {strides = array<i32>} : memref<18x32x128xf32, #tpu.memory_space<vmem>>, vector<1x32x128xf32>,
    %cst_2 = arith.constant 0.000000e+00 : f32
    %2 = vector.broadcast %cst_2 : f32 to vector<1x32x128xf32>
    %c17 = arith.constant 17 : index
    %c0_3 = arith.constant 0 : index
    %c0_4 = arith.constant 0 : index
    %3 = vector.load %arg7[%c17, %c0_3, %c0_4] : memref<18x32x128xf32, #tpu.memory_space<vmem>>, vector<1x32x128xf32>
    tpu.vector_store %arg7[%c17, %c0_3, %c0_4], %2 {strides = array<i32>} : memref<18x32x128xf32, #tpu.memory_space<vmem>>, vector<1x32x128xf32>,
    %cst_5 = arith.constant 0.000000e+00 : f32
    %4 = vector.broadcast %cst_5 : f32 to vector<16x8x128xf32>
    %c1 = arith.constant 1 : index
    %c0_6 = arith.constant 0 : index
    %c0_7 = arith.constant 0 : index
    %5 = vector.load %arg7[%c1, %c0_6, %c0_7] : memref<18x32x128xf32, #tpu.memory_space<vmem>>, vector<16x8x128xf32>
    tpu.vector_store %arg7[%c1, %c0_6, %c0_7], %4 {strides = array<i32>} : memref<18x32x128xf32, #tpu.memory_space<vmem>>, vector<16x8x128xf32>,
    %cst_8 = arith.constant 0.000000e+00 : f32
    %6 = vector.broadcast %cst_8 : f32 to vector<16x8x128xf32>
    %c1_9 = arith.constant 1 : index
    %c24 = arith.constant 24 : index
    %c0_10 = arith.constant 0 : index
    %7 = vector.load %arg7[%c1_9, %c24, %c0_10] : memref<18x32x128xf32, #tpu.memory_space<vmem>>, vector<16x8x128xf32>
    tpu.vector_store %arg7[%c1_9, %c24, %c0_10], %6 {strides = array<i32>} : memref<18x32x128xf32, #tpu.memory_space<vmem>>, vector<16x8x128xf32>,
    %c0_11 = arith.constant 0 : index
    %c0_12 = arith.constant 0 : index
    %c0_13 = arith.constant 0 : index
    %c0_14 = arith.constant 0 : index
    %8 = vector.load %arg1[%c0_11, %c0_12, %c0_13, %c0_14] : memref<1x16x16x128xbf16, #tpu.memory_space<vmem>>, vector<1x16x16x128xbf16>
    %9 = vector.shape_cast %8 : vector<1x16x16x128xbf16> to vector<16x16x128xbf16>
    %10 = vector.shape_cast %9 : vector<16x16x128xbf16> to vector<256x128xbf16>
    %c0_15 = arith.constant 0 : index
    %c0_16 = arith.constant 0 : index
    %11 = vector.load %arg2[%c0_15, %c0_16] : memref<128x128xbf16, #tpu.memory_space<vmem>>, vector<128x128xbf16>
    %cst_17 = arith.constant dense<0.000000e+00> : vector<256x128xf32>
    %12 = tpu.matmul %10, %11, %cst_17 {dimension_numbers = #tpu.dot_dimension_numbers<[1], [0], [0], [1], [0, 0, 1, 1], [], []>} : vector<256x128xbf16>, vector<128x128xbf16>, vector<256x128xf32> -> vector<256x128xf32>
    %c0_18 = arith.constant 0 : index
    %c0_19 = arith.constant 0 : index
    %13 = vector.load %arg3[%c0_18, %c0_19] : memref<1x128xf32, #tpu.memory_space<vmem>>, vector<1x128xf32>
    %14 = vector.broadcast %13 : vector<1x128xf32> to vector<256x128xf32>
    %15 = arith.addf %12, %14 : vector<256x128xf32>
    %cst_20 = arith.constant 0.000000e+00 : f32
    %16 = vector.broadcast %cst_20 : f32 to vector<256x128xf32>
    %17 = arith.maximumf %15, %16 : vector<256x128xf32>
    %18 = vector.shape_cast %17 : vector<256x128xf32> to vector<16x16x128xf32>
    %c1_21 = arith.constant 1 : index
    %c8 = arith.constant 8 : index
    %c0_22 = arith.constant 0 : index
    %19 = vector.load %arg7[%c1_21, %c8, %c0_22] : memref<18x32x128xf32, #tpu.memory_space<vmem>>, vector<16x16x128xf32>
    tpu.vector_store %arg7[%c1_21, %c8, %c0_22], %18 {strides = array<i32>} : memref<18x32x128xf32, #tpu.memory_space<vmem>>, vector<16x16x128xf32>,
    %c0_23 = arith.constant 0 : index
    %c0_24 = arith.constant 0 : index
    %c0_25 = arith.constant 0 : index
    %20 = vector.load %arg7[%c0_23, %c0_24, %c0_25] : memref<18x32x128xf32, #tpu.memory_space<vmem>>, vector<18x32x128xf32>
    %21 = vector.shape_cast %20 : vector<18x32x128xf32> to vector<576x128xf32>
    %c569_i32 = arith.constant 569 : i32
    %22 = tpu.dynamic_rotate %21 by %c569_i32 dim 0 : vector<576x128xf32>, i32 -> vector<576x128xf32>
    %23 = vector.shape_cast %22 : vector<576x128xf32> to vector<18x32x128xf32>
    %c567_i32 = arith.constant 567 : i32
    %24 = tpu.dynamic_rotate %21 by %c567_i32 dim 0 : vector<576x128xf32>, i32 -> vector<576x128xf32>
    %25 = vector.shape_cast %24 : vector<576x128xf32> to vector<18x32x128xf32>
    %26 = vector.extract_strided_slice %23 {offsets = [0, 0, 0], sizes = [16, 16, 128], strides = [1, 1, 1]} : vector<18x32x128xf32> to vector<16x16x128xf32>
    %27 = vector.shape_cast %26 : vector<16x16x128xf32> to vector<256x128xf32>
    %28 = arith.truncf %27 : vector<256x128xf32> to vector<256x128xbf16>
    %c0_26 = arith.constant 0 : index
    %c0_27 = arith.constant 0 : index
    %c0_28 = arith.constant 0 : index
    %29 = vector.load %arg4[%c0_26, %c0_27, %c0_28] : memref<9x128x128xbf16, #tpu.memory_space<vmem>>, vector<1x128x128xbf16>
    %30 = vector.shape_cast %29 : vector<1x128x128xbf16> to vector<128x128xbf16>
    %cst_29 = arith.constant dense<0.000000e+00> : vector<256x128xf32>
    %31 = tpu.matmul %28, %30, %cst_29 {dimension_numbers = #tpu.dot_dimension_numbers<[1], [0], [0], [1], [0, 0, 1, 1], [], []>} : vector<256x128xbf16>, vector<128x128xbf16>, vector<256x128xf32> -> vector<256x128xf32>
    %c0_30 = arith.constant 0 : index
    %c0_31 = arith.constant 0 : index
    %32 = vector.load %arg8[%c0_30, %c0_31] : memref<256x128xf32, #tpu.memory_space<vmem>>, vector<256x128xf32>
    tpu.vector_store %arg8[%c0_30, %c0_31], %31 {strides = array<i32>} : memref<256x128xf32, #tpu.memory_space<vmem>>, vector<256x128xf32>,
    %c0_32 = arith.constant 0 : index
    %c8_33 = arith.constant 8 : index
    %c0_34 = arith.constant 0 : index
    %33 = vector.load %arg7[%c0_32, %c8_33, %c0_34] : memref<18x32x128xf32, #tpu.memory_space<vmem>>, vector<16x16x128xf32>
    %34 = vector.shape_cast %33 : vector<16x16x128xf32> to vector<256x128xf32>
    %35 = arith.truncf %34 : vector<256x128xf32> to vector<256x128xbf16>
    %c1_35 = arith.constant 1 : index
    %c0_36 = arith.constant 0 : index
    %c0_37 = arith.constant 0 : index
    %36 = vector.load %arg4[%c1_35, %c0_36, %c0_37] : memref<9x128x128xbf16, #tpu.memory_space<vmem>>, vector<1x128x128xbf16>
    %37 = vector.shape_cast %36 : vector<1x128x128xbf16> to vector<128x128xbf16>
    %cst_38 = arith.constant dense<0.000000e+00> : vector<256x128xf32>
    %38 = tpu.matmul %35, %37, %cst_38 {dimension_numbers = #tpu.dot_dimension_numbers<[1], [0], [0], [1], [0, 0, 1, 1], [], []>} : vector<256x128xbf16>, vector<128x128xbf16>, vector<256x128xf32> -> vector<256x128xf32>
    %c0_39 = arith.constant 0 : index
    %c0_40 = arith.constant 0 : index
    %39 = vector.load %arg8[%c0_39, %c0_40] : memref<256x128xf32, #tpu.memory_space<vmem>>, vector<256x128xf32>
    %40 = arith.addf %39, %38 : vector<256x128xf32>
    %c0_41 = arith.constant 0 : index
    %c0_42 = arith.constant 0 : index
    %41 = vector.load %arg8[%c0_41, %c0_42] : memref<256x128xf32, #tpu.memory_space<vmem>>, vector<256x128xf32>
    tpu.vector_store %arg8[%c0_41, %c0_42], %40 {strides = array<i32>} : memref<256x128xf32, #tpu.memory_space<vmem>>, vector<256x128xf32>,
    %42 = vector.extract_strided_slice %25 {offsets = [0, 0, 0], sizes = [16, 16, 128], strides = [1, 1, 1]} : vector<18x32x128xf32> to vector<16x16x128xf32>
    %43 = vector.shape_cast %42 : vector<16x16x128xf32> to vector<256x128xf32>
    %44 = arith.truncf %43 : vector<256x128xf32> to vector<256x128xbf16>
    %c2 = arith.constant 2 : index
    %c0_43 = arith.constant 0 : index
    %c0_44 = arith.constant 0 : index
    %45 = vector.load %arg4[%c2, %c0_43, %c0_44] : memref<9x128x128xbf16, #tpu.memory_space<vmem>>, vector<1x128x128xbf16>
    %46 = vector.shape_cast %45 : vector<1x128x128xbf16> to vector<128x128xbf16>
    %cst_45 = arith.constant dense<0.000000e+00> : vector<256x128xf32>
    %47 = tpu.matmul %44, %46, %cst_45 {dimension_numbers = #tpu.dot_dimension_numbers<[1], [0], [0], [1], [0, 0, 1, 1], [], []>} : vector<256x128xbf16>, vector<128x128xbf16>, vector<256x128xf32> -> vector<256x128xf32>
    %c0_46 = arith.constant 0 : index
    %c0_47 = arith.constant 0 : index
    %48 = vector.load %arg8[%c0_46, %c0_47] : memref<256x128xf32, #tpu.memory_space<vmem>>, vector<256x128xf32>
    %49 = arith.addf %48, %47 : vector<256x128xf32>
    %c0_48 = arith.constant 0 : index
    %c0_49 = arith.constant 0 : index
    %50 = vector.load %arg8[%c0_48, %c0_49] : memref<256x128xf32, #tpu.memory_space<vmem>>, vector<256x128xf32>
    tpu.vector_store %arg8[%c0_48, %c0_49], %49 {strides = array<i32>} : memref<256x128xf32, #tpu.memory_space<vmem>>, vector<256x128xf32>,
    %51 = vector.extract_strided_slice %23 {offsets = [1, 0, 0], sizes = [16, 16, 128], strides = [1, 1, 1]} : vector<18x32x128xf32> to vector<16x16x128xf32>
    %52 = vector.shape_cast %51 : vector<16x16x128xf32> to vector<256x128xf32>
    %53 = arith.truncf %52 : vector<256x128xf32> to vector<256x128xbf16>
    %c3 = arith.constant 3 : index
    %c0_50 = arith.constant 0 : index
    %c0_51 = arith.constant 0 : index
    %54 = vector.load %arg4[%c3, %c0_50, %c0_51] : memref<9x128x128xbf16, #tpu.memory_space<vmem>>, vector<1x128x128xbf16>
    %55 = vector.shape_cast %54 : vector<1x128x128xbf16> to vector<128x128xbf16>
    %cst_52 = arith.constant dense<0.000000e+00> : vector<256x128xf32>
    %56 = tpu.matmul %53, %55, %cst_52 {dimension_numbers = #tpu.dot_dimension_numbers<[1], [0], [0], [1], [0, 0, 1, 1], [], []>} : vector<256x128xbf16>, vector<128x128xbf16>, vector<256x128xf32> -> vector<256x128xf32>
    %c0_53 = arith.constant 0 : index
    %c0_54 = arith.constant 0 : index
    %57 = vector.load %arg8[%c0_53, %c0_54] : memref<256x128xf32, #tpu.memory_space<vmem>>, vector<256x128xf32>
    %58 = arith.addf %57, %56 : vector<256x128xf32>
    %c0_55 = arith.constant 0 : index
    %c0_56 = arith.constant 0 : index
    %59 = vector.load %arg8[%c0_55, %c0_56] : memref<256x128xf32, #tpu.memory_space<vmem>>, vector<256x128xf32>
    tpu.vector_store %arg8[%c0_55, %c0_56], %58 {strides = array<i32>} : memref<256x128xf32, #tpu.memory_space<vmem>>, vector<256x128xf32>,
    %c1_57 = arith.constant 1 : index
    %c8_58 = arith.constant 8 : index
    %c0_59 = arith.constant 0 : index
    %60 = vector.load %arg7[%c1_57, %c8_58, %c0_59] : memref<18x32x128xf32, #tpu.memory_space<vmem>>, vector<16x16x128xf32>
    %61 = vector.shape_cast %60 : vector<16x16x128xf32> to vector<256x128xf32>
    %62 = arith.truncf %61 : vector<256x128xf32> to vector<256x128xbf16>
    %c4 = arith.constant 4 : index
    %c0_60 = arith.constant 0 : index
    %c0_61 = arith.constant 0 : index
    %63 = vector.load %arg4[%c4, %c0_60, %c0_61] : memref<9x128x128xbf16, #tpu.memory_space<vmem>>, vector<1x128x128xbf16>
    %64 = vector.shape_cast %63 : vector<1x128x128xbf16> to vector<128x128xbf16>
    %cst_62 = arith.constant dense<0.000000e+00> : vector<256x128xf32>
    %65 = tpu.matmul %62, %64, %cst_62 {dimension_numbers = #tpu.dot_dimension_numbers<[1], [0], [0], [1], [0, 0, 1, 1], [], []>} : vector<256x128xbf16>, vector<128x128xbf16>, vector<256x128xf32> -> vector<256x128xf32>
    %c0_63 = arith.constant 0 : index
    %c0_64 = arith.constant 0 : index
    %66 = vector.load %arg8[%c0_63, %c0_64] : memref<256x128xf32, #tpu.memory_space<vmem>>, vector<256x128xf32>
    %67 = arith.addf %66, %65 : vector<256x128xf32>
    %c0_65 = arith.constant 0 : index
    %c0_66 = arith.constant 0 : index
    %68 = vector.load %arg8[%c0_65, %c0_66] : memref<256x128xf32, #tpu.memory_space<vmem>>, vector<256x128xf32>
    tpu.vector_store %arg8[%c0_65, %c0_66], %67 {strides = array<i32>} : memref<256x128xf32, #tpu.memory_space<vmem>>, vector<256x128xf32>,
    %69 = vector.extract_strided_slice %25 {offsets = [1, 0, 0], sizes = [16, 16, 128], strides = [1, 1, 1]} : vector<18x32x128xf32> to vector<16x16x128xf32>
    %70 = vector.shape_cast %69 : vector<16x16x128xf32> to vector<256x128xf32>
    %71 = arith.truncf %70 : vector<256x128xf32> to vector<256x128xbf16>
    %c5 = arith.constant 5 : index
    %c0_67 = arith.constant 0 : index
    %c0_68 = arith.constant 0 : index
    %72 = vector.load %arg4[%c5, %c0_67, %c0_68] : memref<9x128x128xbf16, #tpu.memory_space<vmem>>, vector<1x128x128xbf16>
    %73 = vector.shape_cast %72 : vector<1x128x128xbf16> to vector<128x128xbf16>
    %cst_69 = arith.constant dense<0.000000e+00> : vector<256x128xf32>
    %74 = tpu.matmul %71, %73, %cst_69 {dimension_numbers = #tpu.dot_dimension_numbers<[1], [0], [0], [1], [0, 0, 1, 1], [], []>} : vector<256x128xbf16>, vector<128x128xbf16>, vector<256x128xf32> -> vector<256x128xf32>
    %c0_70 = arith.constant 0 : index
    %c0_71 = arith.constant 0 : index
    %75 = vector.load %arg8[%c0_70, %c0_71] : memref<256x128xf32, #tpu.memory_space<vmem>>, vector<256x128xf32>
    %76 = arith.addf %75, %74 : vector<256x128xf32>
    %c0_72 = arith.constant 0 : index
    %c0_73 = arith.constant 0 : index
    %77 = vector.load %arg8[%c0_72, %c0_73] : memref<256x128xf32, #tpu.memory_space<vmem>>, vector<256x128xf32>
    tpu.vector_store %arg8[%c0_72, %c0_73], %76 {strides = array<i32>} : memref<256x128xf32, #tpu.memory_space<vmem>>, vector<256x128xf32>,
    %78 = vector.extract_strided_slice %23 {offsets = [2, 0, 0], sizes = [16, 16, 128], strides = [1, 1, 1]} : vector<18x32x128xf32> to vector<16x16x128xf32>
    %79 = vector.shape_cast %78 : vector<16x16x128xf32> to vector<256x128xf32>
    %80 = arith.truncf %79 : vector<256x128xf32> to vector<256x128xbf16>
    %c6 = arith.constant 6 : index
    %c0_74 = arith.constant 0 : index
    %c0_75 = arith.constant 0 : index
    %81 = vector.load %arg4[%c6, %c0_74, %c0_75] : memref<9x128x128xbf16, #tpu.memory_space<vmem>>, vector<1x128x128xbf16>
    %82 = vector.shape_cast %81 : vector<1x128x128xbf16> to vector<128x128xbf16>
    %cst_76 = arith.constant dense<0.000000e+00> : vector<256x128xf32>
    %83 = tpu.matmul %80, %82, %cst_76 {dimension_numbers = #tpu.dot_dimension_numbers<[1], [0], [0], [1], [0, 0, 1, 1], [], []>} : vector<256x128xbf16>, vector<128x128xbf16>, vector<256x128xf32> -> vector<256x128xf32>
    %c0_77 = arith.constant 0 : index
    %c0_78 = arith.constant 0 : index
    %84 = vector.load %arg8[%c0_77, %c0_78] : memref<256x128xf32, #tpu.memory_space<vmem>>, vector<256x128xf32>
    %85 = arith.addf %84, %83 : vector<256x128xf32>
    %c0_79 = arith.constant 0 : index
    %c0_80 = arith.constant 0 : index
    %86 = vector.load %arg8[%c0_79, %c0_80] : memref<256x128xf32, #tpu.memory_space<vmem>>, vector<256x128xf32>
    tpu.vector_store %arg8[%c0_79, %c0_80], %85 {strides = array<i32>} : memref<256x128xf32, #tpu.memory_space<vmem>>, vector<256x128xf32>,
    %c2_81 = arith.constant 2 : index
    %c8_82 = arith.constant 8 : index
    %c0_83 = arith.constant 0 : index
    %87 = vector.load %arg7[%c2_81, %c8_82, %c0_83] : memref<18x32x128xf32, #tpu.memory_space<vmem>>, vector<16x16x128xf32>
    %88 = vector.shape_cast %87 : vector<16x16x128xf32> to vector<256x128xf32>
    %89 = arith.truncf %88 : vector<256x128xf32> to vector<256x128xbf16>
    %c7 = arith.constant 7 : index
    %c0_84 = arith.constant 0 : index
    %c0_85 = arith.constant 0 : index
    %90 = vector.load %arg4[%c7, %c0_84, %c0_85] : memref<9x128x128xbf16, #tpu.memory_space<vmem>>, vector<1x128x128xbf16>
    %91 = vector.shape_cast %90 : vector<1x128x128xbf16> to vector<128x128xbf16>
    %cst_86 = arith.constant dense<0.000000e+00> : vector<256x128xf32>
    %92 = tpu.matmul %89, %91, %cst_86 {dimension_numbers = #tpu.dot_dimension_numbers<[1], [0], [0], [1], [0, 0, 1, 1], [], []>} : vector<256x128xbf16>, vector<128x128xbf16>, vector<256x128xf32> -> vector<256x128xf32>
    %c0_87 = arith.constant 0 : index
    %c0_88 = arith.constant 0 : index
    %93 = vector.load %arg8[%c0_87, %c0_88] : memref<256x128xf32, #tpu.memory_space<vmem>>, vector<256x128xf32>
    %94 = arith.addf %93, %92 : vector<256x128xf32>
    %c0_89 = arith.constant 0 : index
    %c0_90 = arith.constant 0 : index
    %95 = vector.load %arg8[%c0_89, %c0_90] : memref<256x128xf32, #tpu.memory_space<vmem>>, vector<256x128xf32>
    tpu.vector_store %arg8[%c0_89, %c0_90], %94 {strides = array<i32>} : memref<256x128xf32, #tpu.memory_space<vmem>>, vector<256x128xf32>,
    %96 = vector.extract_strided_slice %25 {offsets = [2, 0, 0], sizes = [16, 16, 128], strides = [1, 1, 1]} : vector<18x32x128xf32> to vector<16x16x128xf32>
    %97 = vector.shape_cast %96 : vector<16x16x128xf32> to vector<256x128xf32>
    %98 = arith.truncf %97 : vector<256x128xf32> to vector<256x128xbf16>
    %c8_91 = arith.constant 8 : index
    %c0_92 = arith.constant 0 : index
    %c0_93 = arith.constant 0 : index
    %99 = vector.load %arg4[%c8_91, %c0_92, %c0_93] : memref<9x128x128xbf16, #tpu.memory_space<vmem>>, vector<1x128x128xbf16>
    %100 = vector.shape_cast %99 : vector<1x128x128xbf16> to vector<128x128xbf16>
    %cst_94 = arith.constant dense<0.000000e+00> : vector<256x128xf32>
    %101 = tpu.matmul %98, %100, %cst_94 {dimension_numbers = #tpu.dot_dimension_numbers<[1], [0], [0], [1], [0, 0, 1, 1], [], []>} : vector<256x128xbf16>, vector<128x128xbf16>, vector<256x128xf32> -> vector<256x128xf32>
    %c0_95 = arith.constant 0 : index
    %c0_96 = arith.constant 0 : index
    %102 = vector.load %arg8[%c0_95, %c0_96] : memref<256x128xf32, #tpu.memory_space<vmem>>, vector<256x128xf32>
    %103 = arith.addf %102, %101 : vector<256x128xf32>
    %c0_97 = arith.constant 0 : index
    %c0_98 = arith.constant 0 : index
    %104 = vector.load %arg8[%c0_97, %c0_98] : memref<256x128xf32, #tpu.memory_space<vmem>>, vector<256x128xf32>
    tpu.vector_store %arg8[%c0_97, %c0_98], %103 {strides = array<i32>} : memref<256x128xf32, #tpu.memory_space<vmem>>, vector<256x128xf32>,
    %c0_99 = arith.constant 0 : index
    %c0_100 = arith.constant 0 : index
    %105 = vector.load %arg8[%c0_99, %c0_100] : memref<256x128xf32, #tpu.memory_space<vmem>>, vector<256x128xf32>
    %c0_101 = arith.constant 0 : index
    %c0_102 = arith.constant 0 : index
    %106 = vector.load %arg5[%c0_101, %c0_102] : memref<1x128xf32, #tpu.memory_space<vmem>>, vector<1x128xf32>
    %107 = vector.broadcast %106 : vector<1x128xf32> to vector<256x128xf32>
    %108 = arith.addf %105, %107 : vector<256x128xf32>
    %cst_103 = arith.constant 0.000000e+00 : f32
    %109 = vector.broadcast %cst_103 : f32 to vector<256x128xf32>
    %110 = arith.maximumf %108, %109 : vector<256x128xf32>
    %111 = vector.shape_cast %110 : vector<256x128xf32> to vector<16x16x128xf32>
    %112 = arith.truncf %111 : vector<16x16x128xf32> to vector<16x16x128xbf16>
    %c0_104 = arith.constant 0 : index
    %c0_105 = arith.constant 0 : index
    %c0_106 = arith.constant 0 : index
    %c0_107 = arith.constant 0 : index
    %113 = vector.load %arg6[%c0_104, %c0_105, %c0_106, %c0_107] : memref<1x16x16x128xbf16, #tpu.memory_space<vmem>>, vector<1x16x16x128xbf16>
    %114 = vector.shape_cast %113 : vector<1x16x16x128xbf16> to vector<16x16x128xbf16>
    %115 = vector.shape_cast %112 : vector<16x16x128xbf16> to vector<1x16x16x128xbf16>
    tpu.vector_store %arg6[%c0_104, %c0_105, %c0_106, %c0_107], %115 {strides = array<i32>} : memref<1x16x16x128xbf16, #tpu.memory_space<vmem>>, vector<1x16x16x128xbf16>,
    return
  }
  func.func @transform_0(%arg0: i32) -> (i32, i32, i32, i32) {
    %c0_i32 = arith.constant 0 : i32
    %c0_i32_0 = arith.constant 0 : i32
    %c0_i32_1 = arith.constant 0 : i32
    %c0_i32_2 = arith.constant 0 : i32
    return %arg0, %c0_i32, %c0_i32_0, %c0_i32_1 : i32, i32, i32, i32
  }
  func.func @transform_1(%arg0: i32) -> (i32, i32) {
    %c0_i32 = arith.constant 0 : i32
    %c0_i32_0 = arith.constant 0 : i32
    %c0_i32_1 = arith.constant 0 : i32
    return %c0_i32, %c0_i32_0 : i32, i32
  }
  func.func @transform_2(%arg0: i32) -> (i32, i32) {
    %c0_i32 = arith.constant 0 : i32
    %c0_i32_0 = arith.constant 0 : i32
    %c0_i32_1 = arith.constant 0 : i32
    return %c0_i32, %c0_i32_0 : i32, i32
  }
  func.func @transform_3(%arg0: i32) -> (i32, i32, i32) {
    %c0_i32 = arith.constant 0 : i32
    %c0_i32_0 = arith.constant 0 : i32
    %c0_i32_1 = arith.constant 0 : i32
    %c0_i32_2 = arith.constant 0 : i32
    return %c0_i32, %c0_i32_0, %c0_i32_1 : i32, i32, i32
  }
  func.func @transform_4(%arg0: i32) -> (i32, i32) {
    %c0_i32 = arith.constant 0 : i32
    %c0_i32_0 = arith.constant 0 : i32
    %c0_i32_1 = arith.constant 0 : i32
    return %c0_i32, %c0_i32_0 : i32, i32
  }
  func.func @transform_5(%arg0: i32) -> (i32, i32, i32, i32) {
    %c0_i32 = arith.constant 0 : i32
    %c0_i32_0 = arith.constant 0 : i32
    %c0_i32_1 = arith.constant 0 : i32
    %c0_i32_2 = arith.constant 0 : i32
    return %arg0, %c0_i32, %c0_i32_0, %c0_i32_1 : i32, i32, i32, i32
  }
}

</mosaic_0001>

<bundles_post_ra>
// kernel: double_conv.1
= control target key start
LH: loop header
LB: loop body
LE: loop exit
PB: predicated region body
PF: predicated region fallthrough
CT: control target
= control target key end

     0   :  { %s4241_s18 = smov 0   ;;  %s5589_s0 = inlined_call_operand.vmem [shape: bf16[2,16,16,128], index: 0, kind: input, shape index: {}]   ;;  %s5590_s1 = inlined_call_operand.vmem [shape: bf16[128,128], index: 1, kind: input, shape index: {}]   ;;  %s5591_s2 = inlined_call_operand.vmem [shape: f32[1,128], index: 2, kind: input, shape index: {}]   ;;  %s5592_s3 = inlined_call_operand.vmem [shape: bf16[9,128,128], index: 3, kind: input, shape index: {}]   ;;  %s5593_s4 = inlined_call_operand.vmem [shape: f32[1,128], index: 4, kind: input, shape index: {}]   ;;  %s5594_s5 = inlined_call_operand.vmem [shape: bf16[2,16,16,128], index: 5, kind: output, shape index: {}]  }
   0x1 LB: > { %s3457_s19 = sadd.s32 4294967295, %s4207_s18   ;;  %p3461_p0 = scmp.ge.s32.totalorder %s4207_s18, 1  ;;  %s4207_s18 = sphi %s4241_s18, %s15_s18  }
   0x2   : > { %p187_p1 = scmp.lt.s32.totalorder %s4207_s18, 3 }
   0x4   : > { %p188_p2 = pnand %p3461_p0, %p187_p1 }
   0x6   : > { %191 = sbr.rel (%p188_p2) target bundleno = 1075 (0x433), region = 40 }
   0xb   : > { %v4005_v0 = vld [vmem:[%s5590_s1 + $0x38] sm:$0xff]  ;;  %v4004_v1 = vld [vmem:[%s5590_s1 + $0x30] sm:$0xff]  ;;  %v4003_v2 = vld [vmem:[%s5590_s1 + $0x28] sm:$0xff]  ;;  %p215_p3 = scmp.lt.s32.totalorder %s3457_s19, 1  ;;  %v4209_v40 = vmov 0.0   ;;  %v5595_v54 = vmov 0.0|0.0   ;;  %v742_v55 = vlaneseq }
   0xc   : > { %463 = vmatpush.bf16.msra.mxu0 %v4005_v0  ;;  %4173 = vmatpush.bf16.msra.mxu2 %v4005_v0  ;;  %v4002_v3 = vld [vmem:[%s5590_s1 + $0x20] sm:$0xff]  ;;  %v4001_v4 = vld [vmem:[%s5590_s1 + $0x18] sm:$0xff]  ;;  %v4000_v5 = vld [vmem:[%s5590_s1 + $0x10] sm:$0xff]  ;;  %v4355_v41 = vrot.slane %v4209_v40, 7  ;;  %v4390_v62 = vrot.slane %v4209_v40, 1 }
   0xd   : > { %s5794_s19 = smov (!%p215_p3, %s3457_s19), 1  ;;  %v3999_v6 = vld [vmem:[%s5590_s1 + $0x8] sm:$0xff]  ;;  %v3998_v7 = vld [vmem:[%s5590_s1] sm:$0xff]  ;;  %v4013_v18 = vld [vmem:[%s5592_s3 + $0x38] sm:$0xff]  ;;  %v4387_v59 = vshrl.u32 %v742_v55, 7 }
   0xe   : > { %s3980_s9 = sshll.u32 %s5794_s19, 7  ;;  %v4021_v19 = vld [vmem:[%s5592_s3 + $0x78] sm:$0xff]  ;;  %952 = vmatpush.bf16.msra.mxu1 %v4013_v18  ;;  %v4012_v20 = vld [vmem:[%s5592_s3 + $0x30] sm:$0xff]  ;;  %4181 = vmatpush.bf16.msra.mxu3 %v4013_v18  ;;  %v4011_v22 = vld [vmem:[%s5592_s3 + $0x28] sm:$0xff]  ;;  %v4361_v44 = vpack.c.bf16 %v4355_v41, %v4355_v41 }
   0xf   : > { %s4281_s14 = scalar_lea.vmem %s5589_s0, %s3980_s9  ;;  %v4020_v21 = vld [vmem:[%s5592_s3 + $0x70] sm:$0xff]  ;;  %v4019_v23 = vld [vmem:[%s5592_s3 + $0x68] sm:$0xff]  ;;  %v4010_v24 = vld [vmem:[%s5592_s3 + $0x20] sm:$0xff]  ;;  %vm835_vm0 = vcmp.lt.s32.totalorder %v4387_v59, 7  ;;  %vm744_vm1 = vcmp.lt.s32.totalorder %v4387_v59, 1  ;;  %s5427_s12 = scalar_lea.vmem %s5594_s5, %s3980_s9 }
  0x10   : > { %464 = vmatpush.bf16.msra.mxu0 %v4004_v1  ;;  %4174 = vmatpush.bf16.msra.mxu2 %v4004_v1  ;;  %v3982_v8 = vld [vmem:[%s4281_s14] sm:$0xff]  ;;  %v3983_v10 = vld [vmem:[%s4281_s14 + $0x8] sm:$0xff]  ;;  %v3984_v12 = vld [vmem:[%s4281_s14 + $0x10] sm:$0xff]  ;;  %5616 = vst [vmem:[#allocation4_spill] sm:$0xff] %v4361_v44 }
  0x11   : > { %v3990_v9 = vld [vmem:[%s4281_s14 + $0x40] sm:$0xff]  ;;  %v3991_v11 = vld [vmem:[%s4281_s14 + $0x48] sm:$0xff]  ;;  %v3992_v13 = vld [vmem:[%s4281_s14 + $0x50] sm:$0xff] }
  0x12   : > { %v3985_v14 = vld [vmem:[%s4281_s14 + $0x18] sm:$0xff]  ;;  %v3986_v16 = vld [vmem:[%s4281_s14 + $0x20] sm:$0xff]  ;;  %953 = vmatpush.bf16.msra.mxu1 %v4012_v20  ;;  %4182 = vmatpush.bf16.msra.mxu3 %v4012_v20  ;;  %v3987_v26 = vld [vmem:[%s4281_s14 + $0x28] sm:$0xff] }
  0x13   : > { %v3993_v15 = vld [vmem:[%s4281_s14 + $0x58] sm:$0xff]  ;;  %v3994_v17 = vld [vmem:[%s4281_s14 + $0x60] sm:$0xff]  ;;  %v3995_v27 = vld [vmem:[%s4281_s14 + $0x68] sm:$0xff] }
  0x14   : > { %465 = vmatpush.bf16.msra.mxu0 %v4003_v2  ;;  %4175 = vmatpush.bf16.msra.mxu2 %v4003_v2  ;;  %v4018_v25 = vld [vmem:[%s5592_s3 + $0x60] sm:$0xff]  ;;  %v4009_v28 = vld [vmem:[%s5592_s3 + $0x18] sm:$0xff]  ;;  %v4008_v31 = vld [vmem:[%s5592_s3 + $0x10] sm:$0xff] }
  0x15   : > { %v4037_v29 = vld [vmem:[%s5592_s3 + $0xf8] sm:$0xff]  ;;  %v4036_v32 = vld [vmem:[%s5592_s3 + $0xf0] sm:$0xff]  ;;  %v4007_v34 = vld [vmem:[%s5592_s3 + $0x8] sm:$0xff] }
  0x16   : > { %954 = vmatpush.bf16.msra.mxu1 %v4011_v22  ;;  %4183 = vmatpush.bf16.msra.mxu3 %v4011_v22  ;;  %v4017_v30 = vld [vmem:[%s5592_s3 + $0x58] sm:$0xff]  ;;  %v4016_v33 = vld [vmem:[%s5592_s3 + $0x50] sm:$0xff]  ;;  %v4035_v35 = vld [vmem:[%s5592_s3 + $0xe8] sm:$0xff] }
  0x17   : > { %v4015_v36 = vld [vmem:[%s5592_s3 + $0x48] sm:$0xff]  ;;  %v4006_v37 = vld [vmem:[%s5592_s3] sm:$0xff]  ;;  %v3988_v42 = vld [vmem:[%s4281_s14 + $0x30] sm:$0xff] }
  0x18   : > { %466 = vmatpush.bf16.msra.mxu0 %v4002_v3  ;;  %4176 = vmatpush.bf16.msra.mxu2 %v4002_v3  ;;  %v4034_v38 = vld [vmem:[%s5592_s3 + $0xe0] sm:$0xff]  ;;  %v3996_v43 = vld [vmem:[%s4281_s14 + $0x70] sm:$0xff]  ;;  %v4033_v45 = vld [vmem:[%s5592_s3 + $0xd8] sm:$0xff] }
  0x19   : > { %v4014_v39 = vld [vmem:[%s5592_s3 + $0x40] sm:$0xff]  ;;  %v4032_v46 = vld [vmem:[%s5592_s3 + $0xd0] sm:$0xff]  ;;  %v4031_v47 = vld [vmem:[%s5592_s3 + $0xc8] sm:$0xff] }
  0x1a   : > { %955 = vmatpush.bf16.msra.mxu1 %v4010_v24  ;;  %4184 = vmatpush.bf16.msra.mxu3 %v4010_v24  ;;  %v4030_v48 = vld [vmem:[%s5592_s3 + $0xc0] sm:$0xff]  ;;  %v3989_v49 = vld [vmem:[%s4281_s14 + $0x38] sm:$0xff] }
  0x1b   : > { %v3997_v50 = vld [vmem:[%s4281_s14 + $0x78] sm:$0xff]  ;;  %v4381_v51 = vld [vmem:[%s5591_s2] ss:$0 sm:$0xff] }
  0x1c   : > { %467 = vmatpush.bf16.msra.mxu0 %v4001_v4  ;;  %4177 = vmatpush.bf16.msra.mxu2 %v4001_v4 }
  0x1e   : > { %956 = vmatpush.bf16.msra.mxu1 %v4009_v28  ;;  %4185 = vmatpush.bf16.msra.mxu3 %v4009_v28 }
  0x20   : > { %468 = vmatpush.bf16.msra.mxu0 %v4000_v5  ;;  %4178 = vmatpush.bf16.msra.mxu2 %v4000_v5 }
  0x22   : > { %957 = vmatpush.bf16.msra.mxu1 %v4008_v31  ;;  %4186 = vmatpush.bf16.msra.mxu3 %v4008_v31 }
  0x24   : > { %469 = vmatpush.bf16.msra.mxu0 %v3999_v6  ;;  %4179 = vmatpush.bf16.msra.mxu2 %v3999_v6 }
  0x26   : > { %958 = vmatpush.bf16.msra.mxu1 %v4007_v34  ;;  %4187 = vmatpush.bf16.msra.mxu3 %v4007_v34 }
  0x28   : > { %470 = vmatpush.bf16.msra.mxu0 %v3998_v7  ;;  %4180 = vmatpush.bf16.msra.mxu2 %v3998_v7 }
  0x2a   : > { %959 = vmatpush.bf16.msra.mxu1 %v4006_v37  ;;  %4188 = vmatpush.bf16.msra.mxu3 %v4006_v37 }
  0x2b   : > { %471 = vmatmul.bf16.vlgmr.msra.gmra.mxu0 %v3982_v8  ;;  %511 = vmatmul.bf16.vlgmr.msra.gmra.mxu2 %v3990_v9 }
  0x2c   : > { %1186 = vmatpush.bf16.msrb.mxu2 %v4021_v19  ;;  %1703 = vmatpush.bf16.msrb.mxu0 %v4037_v29 }
  0x2d   : > { %960 = vmatmul.bf16.vlgmr.msra.gmra.mxu1 %v4361_v44 }
  0x30   : > { %1187 = vmatpush.bf16.msrb.mxu2 %v4020_v21  ;;  %1704 = vmatpush.bf16.msrb.mxu0 %v4036_v32 }
  0x34   : > { %1188 = vmatpush.bf16.msrb.mxu2 %v4019_v23  ;;  %1705 = vmatpush.bf16.msrb.mxu0 %v4035_v35 }
  0x38   : > { %1189 = vmatpush.bf16.msrb.mxu2 %v4018_v25  ;;  %1706 = vmatpush.bf16.msrb.mxu0 %v4034_v38 }
  0x3b   : > { %476 = vmatmul.bf16.gmra.mxu0 %v3983_v10  ;;  %516 = vmatmul.bf16.gmra.mxu2 %v3991_v11 }
  0x3c   : > { %1190 = vmatpush.bf16.msrb.mxu2 %v4017_v30  ;;  %1707 = vmatpush.bf16.msrb.mxu0 %v4033_v45 }
  0x40   : > { %1191 = vmatpush.bf16.msrb.mxu2 %v4016_v33  ;;  %1708 = vmatpush.bf16.msrb.mxu0 %v4032_v46 }
  0x44   : > { %1192 = vmatpush.bf16.msrb.mxu2 %v4015_v36  ;;  %1709 = vmatpush.bf16.msrb.mxu0 %v4031_v47 }
  0x48   : > { %1193 = vmatpush.bf16.msrb.mxu2 %v4014_v39  ;;  %1710 = vmatpush.bf16.msrb.mxu0 %v4030_v48 }
  0x4b   : > { %481 = vmatmul.bf16.gmra.mxu0 %v3984_v12  ;;  %521 = vmatmul.bf16.gmra.mxu2 %v3992_v13 }
  0x5b   : > { %486 = vmatmul.bf16.gmra.mxu0 %v3985_v14  ;;  %526 = vmatmul.bf16.gmra.mxu2 %v3993_v15 }
  0x6b   : > { %491 = vmatmul.bf16.gmra.mxu0 %v3986_v16  ;;  %531 = vmatmul.bf16.gmra.mxu2 %v3994_v17 }
  0x7b   : > { %496 = vmatmul.bf16.gmra.mxu0 %v3987_v26  ;;  %536 = vmatmul.bf16.gmra.mxu2 %v3995_v27 }
  0x8b   : > { %501 = vmatmul.bf16.gmra.mxu0 %v3988_v42  ;;  %541 = vmatmul.bf16.gmra.mxu2 %v3996_v43 }
  0x9b   : > { %506 = vmatmul.bf16.gmra.mxu0 %v3989_v49  ;;  %546 = vmatmul.bf16.gmra.mxu2 %v3997_v50 }
  0xa8   : > { %v472_v52 = vpop.f32.mrf.mxu0 }
  0xa9   : > { %v473_v53 = vadd.f32 %v4381_v51, %v472_v52 }
  0xab   : > { %1194 = vmatmul.bf16.vlgmr.msrb.gmra.mxu2 %v5595_v54  ;;  %v552_v57 = vmax.f32 %v473_v53, 0.0 }
  0xad   : > { %v692_v61 = vrot.slane %v552_v57, 7  ;;  %v784_v0 = vrot.slane %v552_v57, 1 }
  0xae   : > { %v4385_v56 = vpop.f32.mrf.mxu2 }
  0xaf   : > { %v778_v7 = vsel %vm744_vm1, %v4355_v41, %v692_v61 }
  0xb0   : > { %v474_v58 = vpop.f32.mrf.mxu0 }
  0xb1   : > { %v475_v60 = vadd.f32 %v4381_v51, %v474_v58 }
  0xb3   : > { %v553_v63 = vmax.f32 %v475_v60, 0.0 }
  0xb5   : > { %v693_v1 = vrot.slane %v553_v63, 7  ;;  %v785_v2 = vrot.slane %v553_v63, 1  ;;  %v4408_v11 = vpack.c.bf16 %v553_v63, %v552_v57 }
  0xb6   : > { %v4394_v3 = vpop.f32.mrf.mxu2 }
  0xb7   : > { %v868_v4 = vsel %vm835_vm0, %v785_v2, %v4390_v62  ;;  %v869_v5 = vsel %vm835_vm0, %v784_v0, %v785_v2  ;;  %v777_v6 = vsel %vm744_vm1, %v692_v61, %v693_v1 }
  0xb8   : > { %v477_v8 = vpop.f32.mrf.mxu0  ;;  %v873_v9 = vpack.c.bf16 %v777_v6, %v778_v7  ;;  %v4406_v10 = vpack.c.bf16 %v868_v4, %v869_v5 }
  0xb9   : > { %v478_v12 = vadd.f32 %v4381_v51, %v477_v8 }
  0xba   : > { %965 = vmatmul.bf16.gmra.mxu1 %v873_v9  ;;  %1711 = vmatmul.bf16.vlgmr.msrb.gmra.mxu0 %v873_v9 }
  0xbb   : > { %1199 = vmatmul.bf16.gmra.mxu2 %v4408_v11  ;;  %v554_v14 = vmax.f32 %v478_v12, 0.0 }
  0xbd   : > { %v695_v17 = vrot.slane %v554_v14, 7  ;;  %v787_v19 = vrot.slane %v554_v14, 1 }
  0xbe   : > { %v4412_v13 = vpop.f32.mrf.mxu2 }
  0xbf   : > { %v776_v24 = vsel %vm744_vm1, %v4355_v41, %v695_v17 }
  0xc0   : > { %v479_v15 = vpop.f32.mrf.mxu0 }
  0xc1   : > { %v480_v16 = vadd.f32 %v4381_v51, %v479_v15 }
  0xc3   : > { %v555_v18 = vmax.f32 %v480_v16, 0.0  ;;  %v4045_v16 = vld [vmem:[%s5592_s3 + $0x138] sm:$0xff] }
  0xc4   : > { %2001 = vmatpush.bf16.msrb.mxu1 %v4045_v16 }
  0xc5   : > { %v696_v20 = vrot.slane %v555_v18, 7  ;;  %v788_v21 = vrot.slane %v555_v18, 1  ;;  %v4431_v30 = vpack.c.bf16 %v555_v18, %v554_v14  ;;  %v4044_v18 = vld [vmem:[%s5592_s3 + $0x130] sm:$0xff] }
  0xc6   : > { %v4415_v22 = vpop.f32.mrf.mxu2 }
  0xc7   : > { %v775_v23 = vsel %vm744_vm1, %v695_v17, %v696_v20  ;;  %v866_v25 = vsel %vm835_vm0, %v788_v21, %v4390_v62  ;;  %v867_v26 = vsel %vm835_vm0, %v787_v19, %v788_v21 }
  0xc8   : > { %v482_v27 = vpop.f32.mrf.mxu0  ;;  %v4427_v28 = vpack.c.bf16 %v775_v23, %v776_v24  ;;  %v4429_v29 = vpack.c.bf16 %v866_v25, %v867_v26  ;;  %2002 = vmatpush.bf16.msrb.mxu1 %v4044_v18  ;;  %v4043_v24 = vld [vmem:[%s5592_s3 + $0x128] sm:$0xff] }
  0xc9   : > { %v483_v31 = vadd.f32 %v4381_v51, %v482_v27 }
  0xca   : > { %5617 = vst [vmem:[#allocation5_spill] sm:$0xff] %v4427_v28  ;;  %970 = vmatmul.bf16.gmra.mxu1 %v4427_v28  ;;  %1716 = vmatmul.bf16.gmra.mxu0 %v4427_v28  ;;  %v4052_v28 = vld [vmem:[%s5592_s3 + $0x170] sm:$0xff] }
  0xcb   : > { %1204 = vmatmul.bf16.gmra.mxu2 %v4431_v30  ;;  %v556_v33 = vmax.f32 %v483_v31, 0.0 }
  0xcc   : > { %2003 = vmatpush.bf16.msrb.mxu1 %v4043_v24 }
  0xcd   : > { %v698_v36 = vrot.slane %v556_v33, 7  ;;  %v790_v38 = vrot.slane %v556_v33, 1 }
  0xce   : > { %v4437_v32 = vpop.f32.mrf.mxu2 }
  0xcf   : > { %v774_v45 = vsel %vm744_vm1, %v4355_v41, %v698_v36 }
  0xd0   : > { %v484_v34 = vpop.f32.mrf.mxu0 }
  0xd1   : > { %v485_v35 = vadd.f32 %v4381_v51, %v484_v34  ;;  %v4042_v34 = vld [vmem:[%s5592_s3 + $0x120] sm:$0xff] }
  0xd2   : > { %2004 = vmatpush.bf16.msrb.mxu1 %v4042_v34 }
  0xd3   : > { %v557_v37 = vmax.f32 %v485_v35, 0.0 }
  0xd5   : > { %v699_v39 = vrot.slane %v557_v37, 7  ;;  %v791_v40 = vrot.slane %v557_v37, 1  ;;  %v4456_v52 = vpack.c.bf16 %v557_v37, %v556_v33 }
  0xd6   : > { %v4440_v42 = vpop.f32.mrf.mxu2 }
  0xd7   : > { %v773_v43 = vsel %vm744_vm1, %v698_v36, %v699_v39  ;;  %v864_v46 = vsel %vm835_vm0, %v791_v40, %v4390_v62  ;;  %v865_v47 = vsel %vm835_vm0, %v790_v38, %v791_v40 }
  0xd8   : > { %v487_v48 = vpop.f32.mrf.mxu0  ;;  %v4452_v49 = vpack.c.bf16 %v773_v43, %v774_v45  ;;  %v4454_v50 = vpack.c.bf16 %v864_v46, %v865_v47  ;;  %v4041_v47 = vld [vmem:[%s5592_s3 + $0x118] sm:$0xff] }
  0xd9   : > { %v488_v53 = vadd.f32 %v4381_v51, %v487_v48  ;;  %2005 = vmatpush.bf16.msrb.mxu1 %v4041_v47 }
  0xda   : > { %5618 = vst [vmem:[#allocation6_spill] sm:$0xff] %v4452_v49  ;;  %975 = vmatmul.bf16.gmra.mxu1 %v4452_v49  ;;  %1721 = vmatmul.bf16.gmra.mxu0 %v4452_v49 }
  0xdb   : > { %1209 = vmatmul.bf16.gmra.mxu2 %v4456_v52  ;;  %v558_v57 = vmax.f32 %v488_v53, 0.0  ;;  %v4040_v53 = vld [vmem:[%s5592_s3 + $0x110] sm:$0xff] }
  0xdd   : > { %v701_v61 = vrot.slane %v558_v57, 7  ;;  %v793_v0 = vrot.slane %v558_v57, 1  ;;  %2006 = vmatpush.bf16.msrb.mxu1 %v4040_v53 }
  0xde   : > { %v4462_v55 = vpop.f32.mrf.mxu2 }
  0xdf   : > { %v772_v6 = vsel %vm744_vm1, %v4355_v41, %v701_v61 }
  0xe0   : > { %v489_v58 = vpop.f32.mrf.mxu0 }
  0xe1   : > { %v490_v60 = vadd.f32 %v4381_v51, %v489_v58 }
  0xe3   : > { %v559_v63 = vmax.f32 %v490_v60, 0.0 }
  0xe5   : > { %v702_v1 = vrot.slane %v559_v63, 7  ;;  %v794_v2 = vrot.slane %v559_v63, 1  ;;  %v4481_v15 = vpack.c.bf16 %v559_v63, %v558_v57  ;;  %v4039_v63 = vld [vmem:[%s5592_s3 + $0x108] sm:$0xff] }
  0xe6   : > { %v4465_v4 = vpop.f32.mrf.mxu2  ;;  %2007 = vmatpush.bf16.msrb.mxu1 %v4039_v63 }
  0xe7   : > { %v771_v5 = vsel %vm744_vm1, %v701_v61, %v702_v1  ;;  %v862_v7 = vsel %vm835_vm0, %v794_v2, %v4390_v62  ;;  %v863_v8 = vsel %vm835_vm0, %v793_v0, %v794_v2 }
  0xe8   : > { %v492_v9 = vpop.f32.mrf.mxu0  ;;  %v4477_v12 = vpack.c.bf16 %v771_v5, %v772_v6  ;;  %v4479_v14 = vpack.c.bf16 %v862_v7, %v863_v8  ;;  %v4038_v7 = vld [vmem:[%s5592_s3 + $0x100] sm:$0xff] }
  0xe9   : > { %v493_v17 = vadd.f32 %v4381_v51, %v492_v9 }
  0xea   : > { %5619 = vst [vmem:[#allocation7_spill] sm:$0xff] %v4477_v12  ;;  %980 = vmatmul.bf16.gmra.mxu1 %v4477_v12  ;;  %1726 = vmatmul.bf16.gmra.mxu0 %v4477_v12 }
  0xeb   : > { %1214 = vmatmul.bf16.gmra.mxu2 %v4481_v15  ;;  %v560_v20 = vmax.f32 %v493_v17, 0.0  ;;  %2008 = vmatpush.bf16.msrb.mxu1 %v4038_v7 }
  0xed   : > { %v704_v25 = vrot.slane %v560_v20, 7  ;;  %v796_v27 = vrot.slane %v560_v20, 1 }
  0xee   : > { %v4493_v19 = vpop.f32.mrf.mxu2 }
  0xef   : > { %v770_v37 = vsel %vm744_vm1, %v4355_v41, %v704_v25  ;;  %v533_v12 = vadd.f32 %v4381_v51, %v4493_v19  ;;  %v4053_v19 = vld [vmem:[%s5592_s3 + $0x178] sm:$0xff] }
  0xf0   : > { %v494_v21 = vpop.f32.mrf.mxu0  ;;  %2252 = vmatpush.bf16.msra.mxu2 %v4053_v19 }
  0xf1   : > { %v495_v23 = vadd.f32 %v4381_v51, %v494_v21 }
  0xf3   : > { %v561_v26 = vmax.f32 %v495_v23, 0.0 }
  0xf4   : > { %2253 = vmatpush.bf16.msra.mxu2 %v4052_v28  ;;  %v4050_v28 = vld [vmem:[%s5592_s3 + $0x160] sm:$0xff] }
  0xf5   : > { %v705_v31 = vrot.slane %v561_v26, 7  ;;  %v797_v33 = vrot.slane %v561_v26, 1  ;;  %v4518_v46 = vpack.c.bf16 %v561_v26, %v560_v20  ;;  %v4029_v26 = vld [vmem:[%s5592_s3 + $0xb8] sm:$0xff] }
  0xf6   : > { %v4502_v35 = vpop.f32.mrf.mxu2  ;;  %1452 = vmatpush.bf16.msrb.mxu3 %v4029_v26 }
  0xf7   : > { %v769_v36 = vsel %vm744_vm1, %v704_v25, %v705_v31  ;;  %v860_v38 = vsel %vm835_vm0, %v797_v33, %v4390_v62  ;;  %v861_v39 = vsel %vm835_vm0, %v796_v27, %v797_v33  ;;  %v535_v49 = vadd.f32 %v4381_v51, %v4502_v35 }
  0xf8   : > { %v497_v40 = vpop.f32.mrf.mxu0  ;;  %v4514_v43 = vpack.c.bf16 %v769_v36, %v770_v37  ;;  %v4516_v45 = vpack.c.bf16 %v860_v38, %v861_v39  ;;  %v4769_v35 = vmax.f32 %v533_v12, 0.0 }
  0xf9   : > { %v498_v48 = vadd.f32 %v4381_v51, %v497_v40 }
  0xfa   : > { %5620 = vst [vmem:[#allocation8_spill] sm:$0xff] %v4514_v43  ;;  %985 = vmatmul.bf16.gmra.mxu1 %v4514_v43  ;;  %1731 = vmatmul.bf16.gmra.mxu0 %v4514_v43 }
  0xfb   : > { %1219 = vmatmul.bf16.gmra.mxu2 %v4518_v46  ;;  %v562_v58 = vmax.f32 %v498_v48, 0.0 }
  0xfd   : > { %v707_v0 = vrot.slane %v562_v58, 7  ;;  %v799_v2 = vrot.slane %v562_v58, 1 }
  0xfe   : > { %v4530_v57 = vpop.f32.mrf.mxu2 }
  0xff   : > { %v768_v16 = vsel %vm744_vm1, %v4355_v41, %v707_v0 }
 0x100   : > { %v499_v60 = vpop.f32.mrf.mxu0 }
 0x101   : > { %v500_v61 = vadd.f32 %v4381_v51, %v499_v60 }
 0x103   : > { %v563_v1 = vmax.f32 %v500_v61, 0.0 }
 0x105   : > { %v708_v5 = vrot.slane %v563_v1, 7  ;;  %v800_v6 = vrot.slane %v563_v1, 1  ;;  %v4555_v24 = vpack.c.bf16 %v563_v1, %v562_v58 }
 0x106   : > { %v4539_v8 = vpop.f32.mrf.mxu2 }
 0x107   : > { %v767_v9 = vsel %vm744_vm1, %v707_v0, %v708_v5  ;;  %v858_v17 = vsel %vm835_vm0, %v800_v6, %v4390_v62  ;;  %v859_v18 = vsel %vm835_vm0, %v799_v2, %v800_v6  ;;  %v4028_v2 = vld [vmem:[%s5592_s3 + $0xb0] sm:$0xff] }
 0x108   : > { %v502_v20 = vpop.f32.mrf.mxu0  ;;  %v4551_v21 = vpack.c.bf16 %v767_v9, %v768_v16  ;;  %v4553_v23 = vpack.c.bf16 %v858_v17, %v859_v18  ;;  %1453 = vmatpush.bf16.msrb.mxu3 %v4028_v2 }
 0x109   : > { %v503_v25 = vadd.f32 %v4381_v51, %v502_v20  ;;  %v961_v20 = vpop.f32.mrf.mxu1 }
 0x10a   : > { %5621 = vst [vmem:[#allocation9_spill] sm:$0xff] %v4551_v21  ;;  %990 = vmatmul.bf16.gmra.mxu1 %v4551_v21  ;;  %1736 = vmatmul.bf16.gmra.mxu0 %v4551_v21 }
 0x10b   : > { %1224 = vmatmul.bf16.gmra.mxu2 %v4555_v24  ;;  %v564_v31 = vmax.f32 %v503_v25, 0.0 }
 0x10d   : > { %v710_v36 = vrot.slane %v564_v31, 7  ;;  %v802_v38 = vrot.slane %v564_v31, 1 }
 0x10e   : > { %v4564_v27 = vpop.f32.mrf.mxu2 }
 0x10f   : > { %v766_v53 = vsel %vm744_vm1, %v4355_v41, %v710_v36 }
 0x110   : > { %v504_v33 = vpop.f32.mrf.mxu0 }
 0x111   : > { %v505_v34 = vadd.f32 %v4381_v51, %v504_v33 }
 0x113   : > { %v565_v37 = vmax.f32 %v505_v34, 0.0 }
 0x115   : > { %v711_v39 = vrot.slane %v565_v37, 7  ;;  %v803_v40 = vrot.slane %v565_v37, 1  ;;  %v4583_v1 = vpack.c.bf16 %v565_v37, %v564_v31 }
 0x116   : > { %v4567_v47 = vpop.f32.mrf.mxu2 }
 0x117   : > { %v765_v48 = vsel %vm744_vm1, %v710_v36, %v711_v39  ;;  %v856_v58 = vsel %vm835_vm0, %v803_v40, %v4390_v62  ;;  %v857_v60 = vsel %vm835_vm0, %v802_v38, %v803_v40 }
 0x118   : > { %v507_v61 = vpop.f32.mrf.mxu0  ;;  %v4579_v63 = vpack.c.bf16 %v765_v48, %v766_v53  ;;  %v4581_v0 = vpack.c.bf16 %v856_v58, %v857_v60  ;;  %v513_v48 = vadd.f32 %v4381_v51, %v4385_v56  ;;  %v515_v53 = vadd.f32 %v4381_v51, %v4394_v3  ;;  %v4027_v60 = vld [vmem:[%s5592_s3 + $0xa8] sm:$0xff]  ;;  %v963_v3 = vpop.f32.mrf.mxu1 }
 0x119   : > { %v508_v5 = vadd.f32 %v4381_v51, %v507_v61  ;;  %1454 = vmatpush.bf16.msrb.mxu3 %v4027_v60 }
 0x11a   : > { %5622 = vst [vmem:[#allocation10_spill] sm:$0xff] %v4579_v63  ;;  %995 = vmatmul.bf16.gmra.mxu1 %v4579_v63  ;;  %1741 = vmatmul.bf16.gmra.mxu0 %v4579_v63  ;;  %v4624_v61 = vmax.f32 %v513_v48, 0.0  ;;  %v4626_v56 = vmax.f32 %v515_v53, 0.0 }
 0x11b   : > { %1229 = vmatmul.bf16.gmra.mxu2 %v4583_v1  ;;  %v566_v7 = vmax.f32 %v508_v5, 0.0 }
 0x11d   : > { %v713_v17 = vrot.slane %v566_v7, 7  ;;  %v805_v25 = vrot.slane %v566_v7, 1 }
 0x11e   : > { %v4592_v6 = vpop.f32.mrf.mxu2 }
 0x11f   : > { %v764_v36 = vsel %vm744_vm1, %v4355_v41, %v713_v17 }
 0x120   : > { %v509_v9 = vpop.f32.mrf.mxu0 }
 0x121   : > { %v510_v16 = vadd.f32 %v4381_v51, %v509_v9  ;;  %v717_v9 = vrot.slane %v4626_v56, 7 }
 0x123   : > { %v567_v18 = vmax.f32 %v510_v16, 0.0 }
 0x125   : > { %v714_v26 = vrot.slane %v567_v18, 7  ;;  %v806_v31 = vrot.slane %v567_v18, 1  ;;  %v4615_v58 = vpack.c.bf16 %v567_v18, %v566_v7  ;;  %v716_v7 = vrot.slane %v4624_v61, 7 }
 0x126   : > { %v4595_v33 = vpop.f32.mrf.mxu2 }
 0x127   : > { %v763_v34 = vsel %vm744_vm1, %v713_v17, %v714_v26  ;;  %v854_v37 = vsel %vm835_vm0, %v806_v31, %v4390_v62  ;;  %v855_v38 = vsel %vm835_vm0, %v805_v25, %v806_v31  ;;  %v761_v16 = vsel %vm744_vm1, %v716_v7, %v717_v9 }
 0x128   : > { %v4607_v39 = vpack.c.bf16 %v763_v34, %v764_v36  ;;  %v4609_v40 = vpack.c.bf16 %v854_v37, %v855_v38  ;;  %v520_v34 = vadd.f32 %v4381_v51, %v4415_v22  ;;  %v4649_v36 = vpack.c.bf16 %v4626_v56, %v4624_v61  ;;  %v4026_v37 = vld [vmem:[%s5592_s3 + $0xa0] sm:$0xff] }
 0x129   : > { %1455 = vmatpush.bf16.msrb.mxu3 %v4026_v37  ;;  %v525_v37 = vadd.f32 %v4381_v51, %v4440_v42 }
 0x12a   : > { %5623 = vst [vmem:[#allocation11_spill] sm:$0xff] %v4607_v39  ;;  %1000 = vmatmul.bf16.vlgmr.msra.gmra.mxu3 %v4607_v39  ;;  %1746 = vmatmul.bf16.gmra.mxu0 %v4607_v39  ;;  %v4660_v22 = vmax.f32 %v520_v34, 0.0  ;;  %v523_v34 = vadd.f32 %v4381_v51, %v4437_v32  ;;  %v530_v39 = vadd.f32 %v4381_v51, %v4465_v4 }
 0x12b   : > { %2009 = vmatmul.bf16.vlgmr.msrb.gmra.mxu1 %v4408_v11  ;;  %1234 = vmatmul.bf16.gmra.mxu2 %v4615_v58  ;;  %v762_v11 = vsel %vm744_vm1, %v4355_v41, %v716_v7  ;;  %v4696_v42 = vmax.f32 %v525_v37, 0.0 }
 0x12c   : > { %v4641_v31 = vpack.c.bf16 %v761_v16, %v762_v11  ;;  %v4694_v32 = vmax.f32 %v523_v34, 0.0 }
 0x12d   : > { %v723_v54 = vrot.slane %v4696_v42, 7 }
 0x12e   : > { %v1195_v2 = vpop.f32.mrf.mxu2  ;;  %5624 = vst [vmem:[#allocation12_spill] sm:$0xff] %v4641_v31 }
 0x12f   : > { %v4628_v5 = vadd.f32 %v1195_v2, %v961_v20  ;;  %v518_v20 = vadd.f32 %v4381_v51, %v4412_v13  ;;  %v720_v2 = vrot.slane %v4660_v22, 7 }
 0x131   : > { %v4658_v13 = vmax.f32 %v518_v20, 0.0 }
 0x136   : > { %v1197_v17 = vpop.f32.mrf.mxu2 }
 0x137   : > { %v4637_v18 = vadd.f32 %v1197_v17, %v963_v3  ;;  %v966_v25 = vpop.f32.mrf.mxu1  ;;  %v4639_v26 = vpop.f32.mrf.mxu0  ;;  %v719_v3 = vrot.slane %v4658_v13, 7 }
 0x139   : > { %v759_v7 = vsel %vm744_vm1, %v719_v3, %v720_v2  ;;  %v760_v9 = vsel %vm744_vm1, %v4355_v41, %v719_v3 }
 0x13a   : > { %1005 = vmatmul.bf16.gmra.mxu3 %v4641_v31  ;;  %1751 = vmatmul.bf16.gmra.mxu0 %v4641_v31  ;;  %v4677_v20 = vpack.c.bf16 %v759_v7, %v760_v9  ;;  %v528_v31 = vadd.f32 %v4381_v51, %v4462_v55  ;;  %v4732_v55 = vmax.f32 %v530_v39, 0.0 }
 0x13b   : > { %2014 = vmatmul.bf16.gmra.mxu1 %v4431_v30  ;;  %1239 = vmatmul.bf16.gmra.mxu2 %v4649_v36 }
 0x13c   : > { %5625 = vst [vmem:[#allocation13_spill] sm:$0xff] %v4677_v20  ;;  %v726_v63 = vrot.slane %v4732_v55, 7 }
 0x13e   : > { %v1200_v38 = vpop.f32.mrf.mxu2 }
 0x13f   : > { %v4662_v48 = vadd.f32 %v1200_v38, %v966_v25  ;;  %v968_v53 = vpop.f32.mrf.mxu1  ;;  %v4664_v60 = vpop.f32.mrf.mxu0  ;;  %v4685_v38 = vpack.c.bf16 %v4660_v22, %v4658_v13 }
 0x146   : > { %v1202_v16 = vpop.f32.mrf.mxu2 }
 0x147   : > { %v4673_v11 = vadd.f32 %v1202_v16, %v968_v53  ;;  %v971_v17 = vpop.f32.mrf.mxu1  ;;  %v4675_v25 = vpop.f32.mrf.mxu0  ;;  %v4025_v53 = vld [vmem:[%s5592_s3 + $0x98] sm:$0xff]  ;;  %v722_v16 = vrot.slane %v4694_v32, 7 }
 0x148   : > { %1456 = vmatpush.bf16.msrb.mxu3 %v4025_v53 }
 0x149   : > { %v757_v44 = vsel %vm744_vm1, %v722_v16, %v723_v54  ;;  %v758_v34 = vsel %vm744_vm1, %v4355_v41, %v722_v16  ;;  %v4721_v54 = vpack.c.bf16 %v4696_v42, %v4694_v32 }
 0x14a   : > { %1010 = vmatmul.bf16.gmra.mxu3 %v4677_v20  ;;  %1756 = vmatmul.bf16.gmra.mxu0 %v4677_v20 }
 0x14b   : > { %2019 = vmatmul.bf16.gmra.mxu1 %v4456_v52  ;;  %1244 = vmatmul.bf16.gmra.mxu2 %v4685_v38 }
 0x14e   : > { %v1205_v3 = vpop.f32.mrf.mxu2 }
 0x14f   : > { %v4698_v2 = vadd.f32 %v1205_v3, %v971_v17  ;;  %v973_v7 = vpop.f32.mrf.mxu1  ;;  %v4700_v9 = vpop.f32.mrf.mxu0  ;;  %v4713_v3 = vpack.c.bf16 %v757_v44, %v758_v34  ;;  %v4730_v44 = vmax.f32 %v528_v31, 0.0 }
 0x151   : > { %5626 = vst [vmem:[#allocation14_spill] sm:$0xff] %v4713_v3 }
 0x156   : > { %v1207_v53 = vpop.f32.mrf.mxu2 }
 0x157   : > { %v4709_v37 = vadd.f32 %v1207_v53, %v973_v7  ;;  %v976_v20 = vpop.f32.mrf.mxu1  ;;  %v4711_v17 = vpop.f32.mrf.mxu0  ;;  %v4024_v7 = vld [vmem:[%s5592_s3 + $0x90] sm:$0xff] }
 0x158   : > { %1457 = vmatpush.bf16.msrb.mxu3 %v4024_v7 }
 0x15a   : > { %1015 = vmatmul.bf16.gmra.mxu3 %v4713_v3  ;;  %1761 = vmatmul.bf16.gmra.mxu0 %v4713_v3  ;;  %v725_v3 = vrot.slane %v4730_v44, 7 }
 0x15b   : > { %2024 = vmatmul.bf16.gmra.mxu1 %v4481_v15  ;;  %1249 = vmatmul.bf16.gmra.mxu2 %v4721_v54 }
 0x15c   : > { %v755_v21 = vsel %vm744_vm1, %v725_v3, %v726_v63  ;;  %v756_v31 = vsel %vm744_vm1, %v4355_v41, %v725_v3  ;;  %v4757_v63 = vpack.c.bf16 %v4732_v55, %v4730_v44  ;;  %v4023_v3 = vld [vmem:[%s5592_s3 + $0x88] sm:$0xff] }
 0x15d   : > { %1458 = vmatpush.bf16.msrb.mxu3 %v4023_v3 }
 0x15e   : > { %v1210_v4 = vpop.f32.mrf.mxu2 }
 0x15f   : > { %v4734_v16 = vadd.f32 %v1210_v4, %v976_v20  ;;  %v978_v34 = vpop.f32.mrf.mxu1  ;;  %v4736_v53 = vpop.f32.mrf.mxu0  ;;  %v4749_v4 = vpack.c.bf16 %v755_v21, %v756_v31  ;;  %v4771_v21 = vmax.f32 %v535_v49, 0.0  ;;  %v4051_v49 = vld [vmem:[%s5592_s3 + $0x168] sm:$0xff] }
 0x160   : > { %2254 = vmatpush.bf16.msra.mxu2 %v4051_v49 }
 0x161   : > { %5627 = vst [vmem:[#allocation15_spill] sm:$0xff] %v4734_v16  ;;  %v540_v16 = vadd.f32 %v4381_v51, %v4539_v8  ;;  %v4049_v8 = vld [vmem:[%s5592_s3 + $0x158] sm:$0xff] }
 0x162   : > { %5630 = vst [vmem:[#allocation18_spill] sm:$0xff] %v4749_v4 }
 0x164   : > { %2255 = vmatpush.bf16.msra.mxu2 %v4050_v28 }
 0x166   : > { %v1212_v7 = vpop.f32.mrf.mxu2 }
 0x167   : > { %v4745_v39 = vadd.f32 %v1212_v7, %v978_v34  ;;  %v981_v43 = vpop.f32.mrf.mxu1  ;;  %v4747_v20 = vpop.f32.mrf.mxu0 }
 0x168   : > { %5629 = vst [vmem:[#allocation17_spill] sm:$0xff] %v4747_v20  ;;  %v729_v20 = vrot.slane %v4771_v21, 7  ;;  %2256 = vmatpush.bf16.msra.mxu2 %v4049_v8 }
 0x169   : > { %5628 = vst [vmem:[#allocation16_spill] sm:$0xff] %v4745_v39  ;;  %v728_v39 = vrot.slane %v4769_v35, 7 }
 0x16a   : > { %1020 = vmatmul.bf16.gmra.mxu3 %v4749_v4  ;;  %1766 = vmatmul.bf16.gmra.mxu0 %v4749_v4 }
 0x16b   : > { %2029 = vmatmul.bf16.gmra.mxu1 %v4518_v46  ;;  %1254 = vmatmul.bf16.gmra.mxu2 %v4757_v63  ;;  %v753_v12 = vsel %vm744_vm1, %v728_v39, %v729_v20  ;;  %v538_v20 = vadd.f32 %v4381_v51, %v4530_v57  ;;  %v4069_v57 = vld [vmem:[%s5592_s3 + $0x1f8] sm:$0xff] }
 0x16c   : > { %2802 = vmatpush.bf16.msra.mxu0 %v4069_v57 }
 0x16d   : > { %v4820_v49 = vmax.f32 %v538_v20, 0.0 }
 0x16e   : > { %v1215_v34 = vpop.f32.mrf.mxu2 }
 0x16f   : > { %v4773_v31 = vadd.f32 %v1215_v34, %v981_v43  ;;  %v983_v7 = vpop.f32.mrf.mxu1  ;;  %v4775_v4 = vpop.f32.mrf.mxu0  ;;  %v754_v43 = vsel %vm744_vm1, %v4355_v41, %v728_v39  ;;  %v4805_v39 = vpack.c.bf16 %v4771_v21, %v4769_v35  ;;  %v731_v20 = vrot.slane %v4820_v49, 7 }
 0x170   : > { %5632 = vst [vmem:[#allocation20_spill] sm:$0xff] %v4775_v4  ;;  %v4797_v4 = vpack.c.bf16 %v753_v12, %v754_v43  ;;  %v4822_v12 = vmax.f32 %v540_v16, 0.0  ;;  %v4067_v16 = vld [vmem:[%s5592_s3 + $0x1e8] sm:$0xff] }
 0x171   : > { %5631 = vst [vmem:[#allocation19_spill] sm:$0xff] %v4773_v31 }
 0x172   : > { %5635 = vst [vmem:[#allocation23_spill] sm:$0xff] %v4797_v4  ;;  %v732_v57 = vrot.slane %v4822_v12, 7 }
 0x173   : > { %5636 = vst [vmem:[#allocation24_spill] sm:$0xff] %v4822_v12 }
 0x174   : > { %v751_v8 = vsel %vm744_vm1, %v731_v20, %v732_v57 }
 0x176   : > { %v1217_v3 = vpop.f32.mrf.mxu2 }
 0x177   : > { %v4790_v19 = vadd.f32 %v1217_v3, %v983_v7  ;;  %v986_v34 = vpop.f32.mrf.mxu1  ;;  %v4792_v31 = vpop.f32.mrf.mxu0  ;;  %v4022_v7 = vld [vmem:[%s5592_s3 + $0x80] sm:$0xff]  ;;  %v4068_v3 = vld [vmem:[%s5592_s3 + $0x1f0] sm:$0xff] }
 0x178   : > { %5634 = vst [vmem:[#allocation22_spill] sm:$0xff] %v4792_v31  ;;  %1459 = vmatpush.bf16.msrb.mxu3 %v4022_v7  ;;  %v4048_v7 = vld [vmem:[%s5592_s3 + $0x150] sm:$0xff]  ;;  %2803 = vmatpush.bf16.msra.mxu0 %v4068_v3 }
 0x179   : > { %5633 = vst [vmem:[#allocation21_spill] sm:$0xff] %v4790_v19  ;;  %2257 = vmatpush.bf16.msra.mxu2 %v4048_v7 }
 0x17a   : > { %1025 = vmatmul.bf16.gmra.mxu3 %v4797_v4  ;;  %1771 = vmatmul.bf16.gmra.mxu0 %v4797_v4 }
 0x17b   : > { %2034 = vmatmul.bf16.gmra.mxu1 %v4555_v24  ;;  %1259 = vmatmul.bf16.gmra.mxu2 %v4805_v39 }
 0x17c   : > { %2804 = vmatpush.bf16.msra.mxu0 %v4067_v16  ;;  %v4046_v16 = vld [vmem:[%s5592_s3 + $0x140] sm:$0xff] }
 0x17e   : > { %v1220_v43 = vpop.f32.mrf.mxu2 }
 0x17f   : > { %v4827_v28 = vadd.f32 %v1220_v43, %v986_v34  ;;  %v988_v31 = vpop.f32.mrf.mxu1  ;;  %v4829_v4 = vpop.f32.mrf.mxu0  ;;  %v4047_v34 = vld [vmem:[%s5592_s3 + $0x148] sm:$0xff]  ;;  %v752_v43 = vsel %vm744_vm1, %v4355_v41, %v731_v20  ;;  %v543_v20 = vadd.f32 %v4381_v51, %v4564_v27  ;;  %v4061_v27 = vld [vmem:[%s5592_s3 + $0x1b8] sm:$0xff] }
 0x180   : > { %5638 = vst [vmem:[#allocation26_spill] sm:$0xff] %v4829_v4  ;;  %2258 = vmatpush.bf16.msra.mxu2 %v4047_v34  ;;  %v4066_v4 = vld [vmem:[%s5592_s3 + $0x1e0] sm:$0xff]  ;;  %v4857_v57 = vpack.c.bf16 %v751_v8, %v752_v43  ;;  %v545_v34 = vadd.f32 %v4381_v51, %v4567_v47  ;;  %v4065_v8 = vld [vmem:[%s5592_s3 + $0x1d8] sm:$0xff]  ;;  %2503 = vmatpush.bf16.msra.mxu3 %v4061_v27 }
 0x181   : > { %5637 = vst [vmem:[#allocation25_spill] sm:$0xff] %v4827_v28  ;;  %2805 = vmatpush.bf16.msra.mxu0 %v4066_v4  ;;  %v4877_v47 = vmax.f32 %v543_v20, 0.0  ;;  %v4077_v20 = vld [vmem:[%s5592_s3 + $0x238] sm:$0xff] }
 0x182   : > { %5641 = vst [vmem:[#allocation29_spill] sm:$0xff] %v4857_v57  ;;  %v4879_v4 = vmax.f32 %v545_v34, 0.0  ;;  %3053 = vmatpush.bf16.msra.mxu1 %v4077_v20 }
 0x183   : > { %5642 = vst [vmem:[#allocation30_spill] sm:$0xff] %v4877_v47  ;;  %v734_v34 = vrot.slane %v4877_v47, 7 }
 0x184   : > { %2259 = vmatpush.bf16.msra.mxu2 %v4046_v16  ;;  %5643 = vst [vmem:[#allocation31_spill] sm:$0xff] %v4879_v4 }
 0x185   : > { %2806 = vmatpush.bf16.msra.mxu0 %v4065_v8  ;;  %v735_v8 = vrot.slane %v4879_v4, 7 }
 0x186   : > { %v1222_v3 = vpop.f32.mrf.mxu2 }
 0x187   : > { %v4850_v28 = vadd.f32 %v1222_v3, %v988_v31  ;;  %v991_v7 = vpop.f32.mrf.mxu1  ;;  %v4855_v19 = vpop.f32.mrf.mxu0  ;;  %v4865_v31 = vpack.c.bf16 %v4822_v12, %v4820_v49  ;;  %v4064_v3 = vld [vmem:[%s5592_s3 + $0x1d0] sm:$0xff] }
 0x188   : > { %5640 = vst [vmem:[#allocation28_spill] sm:$0xff] %v4855_v19 }
 0x189   : > { %5639 = vst [vmem:[#allocation27_spill] sm:$0xff] %v4850_v28  ;;  %2807 = vmatpush.bf16.msra.mxu0 %v4064_v3  ;;  %v548_v28 = vadd.f32 %v4381_v51, %v4592_v6 }
 0x18a   : > { %1030 = vmatmul.bf16.gmra.mxu3 %v4857_v57  ;;  %1776 = vmatmul.bf16.gmra.mxu0 %v4857_v57  ;;  %v4063_v57 = vld [vmem:[%s5592_s3 + $0x1c8] sm:$0xff] }
 0x18b   : > { %2039 = vmatmul.bf16.gmra.mxu1 %v4583_v1  ;;  %1264 = vmatmul.bf16.gmra.mxu2 %v4865_v31 }
 0x18d   : > { %2808 = vmatpush.bf16.msra.mxu0 %v4063_v57 }
 0x18e   : > { %v1225_v43 = vpop.f32.mrf.mxu2 }
 0x18f   : > { %v4884_v16 = vadd.f32 %v1225_v43, %v991_v7  ;;  %v993_v19 = vpop.f32.mrf.mxu1  ;;  %v4894_v27 = vpop.f32.mrf.mxu0  ;;  %v749_v7 = vsel %vm744_vm1, %v734_v34, %v735_v8  ;;  %v750_v43 = vsel %vm744_vm1, %v4355_v41, %v734_v34  ;;  %v4914_v34 = vpack.c.bf16 %v4879_v4, %v4877_v47 }
 0x190   : > { %5645 = vst [vmem:[#allocation33_spill] sm:$0xff] %v4894_v27  ;;  %v550_v27 = vadd.f32 %v4381_v51, %v4595_v33  ;;  %v4910_v12 = vpack.c.bf16 %v749_v7, %v750_v43  ;;  %v4918_v8 = vmax.f32 %v548_v28, 0.0 }
 0x191   : > { %5644 = vst [vmem:[#allocation32_spill] sm:$0xff] %v4884_v16  ;;  %v4062_v16 = vld [vmem:[%s5592_s3 + $0x1c0] sm:$0xff] }
 0x192   : > { %5647 = vst [vmem:[#allocation35_spill] sm:$0xff] %v4910_v12  ;;  %2809 = vmatpush.bf16.msra.mxu0 %v4062_v16  ;;  %v4920_v6 = vmax.f32 %v550_v27, 0.0 }
 0x194   : > { %v738_v16 = vrot.slane %v4920_v6, 7 }
 0x196   : > { %v1227_v3 = vpop.f32.mrf.mxu2 }
 0x197   : > { %v4908_v20 = vadd.f32 %v1227_v3, %v993_v19  ;;  %v996_v57 = vpop.f32.mrf.mxu1  ;;  %v4924_v51 = vpop.f32.mrf.mxu0  ;;  %v737_v19 = vrot.slane %v4918_v8, 7 }
 0x198   : > { %5648 = vst [vmem:[#allocation36_spill] sm:$0xff] %v4924_v51  ;;  %v4939_v51 = vpack.c.bf16 %v4390_v62, %v4390_v62 }
 0x199   : > { %5646 = vst [vmem:[#allocation34_spill] sm:$0xff] %v4908_v20  ;;  %v747_v28 = vsel %vm744_vm1, %v737_v19, %v738_v16  ;;  %v748_v27 = vsel %vm744_vm1, %v4355_v41, %v737_v19  ;;  %v4060_v41 = vld [vmem:[%s5592_s3 + $0x1b0] sm:$0xff] }
 0x19a   : > { %1035 = vmatmul.bf16.gmra.mxu3 %v4910_v12  ;;  %1781 = vmatmul.bf16.gmra.mxu0 %v4910_v12  ;;  %5651 = vst [vmem:[#allocation39_spill] sm:$0xff] %v4939_v51  ;;  %v4941_v20 = vpack.c.bf16 %v747_v28, %v748_v27  ;;  %v4076_v28 = vld [vmem:[%s5592_s3 + $0x230] sm:$0xff] }
 0x19b   : > { %2044 = vmatmul.bf16.gmra.mxu1 %v4615_v58  ;;  %1269 = vmatmul.bf16.gmra.mxu2 %v4914_v34 }
 0x19c   : > { %5652 = vst [vmem:[#allocation40_spill] sm:$0xff] %v4941_v20  ;;  %2504 = vmatpush.bf16.msra.mxu3 %v4060_v41  ;;  %3054 = vmatpush.bf16.msra.mxu1 %v4076_v28 }
 0x19e   : > { %v1230_v33 = vpop.f32.mrf.mxu2 }
 0x19f   : > { %v4928_v7 = vadd.f32 %v1230_v33, %v996_v57  ;;  %v998_v43 = vpop.f32.mrf.mxu1  ;;  %v4935_v3 = vpop.f32.mrf.mxu0 }
 0x1a0   : > { %5650 = vst [vmem:[#allocation38_spill] sm:$0xff] %v4935_v3 }
 0x1a1   : > { %5649 = vst [vmem:[#allocation37_spill] sm:$0xff] %v4928_v7 }
 0x1a6   : > { %v1232_v12 = vpop.f32.mrf.mxu2 }
 0x1a7   : > { %v4943_v4 = vadd.f32 %v1232_v12, %v998_v43  ;;  %v4956_v12 = vpop.f32.mrf.mxu0 }
 0x1a8   : > { %v4945_v57 = vpop.f32.mrf.mxu1  ;;  %5655 = vst [vmem:[#allocation43_spill] sm:$0xff] %v4956_v12 }
 0x1a9   : > { %5653 = vst [vmem:[#allocation41_spill] sm:$0xff] %v4943_v4 }
 0x1aa   : > { %1460 = vmatmul.bf16.vlgmr.msrb.gmra.mxu3 %v4939_v51  ;;  %1786 = vmatmul.bf16.gmra.mxu0 %v4941_v20 }
 0x1ab   : > { %2049 = vmatmul.bf16.gmra.mxu1 %v4649_v36  ;;  %2260 = vmatmul.bf16.vlgmr.msra.gmra.mxu2 %v4406_v10 }
 0x1ad   : > { %v1001_v33 = vpop.f32.mrf.mxu3 }
 0x1ae   : > { %v1235_v19 = vpop.f32.mrf.mxu2 }
 0x1af   : > { %v4954_v16 = vadd.f32 %v1235_v19, %v1001_v33  ;;  %v4967_v4 = vpop.f32.mrf.mxu0 }
 0x1b0   : > { %v4958_v43 = vpop.f32.mrf.mxu1  ;;  %5657 = vst [vmem:[#allocation45_spill] sm:$0xff] %v4967_v4 }
 0x1b1   : > { %5654 = vst [vmem:[#allocation42_spill] sm:$0xff] %v4954_v16 }
 0x1b5   : > { %v1003_v27 = vpop.f32.mrf.mxu3 }
 0x1b6   : > { %v1237_v3 = vpop.f32.mrf.mxu2 }
 0x1b7   : > { %v4963_v20 = vadd.f32 %v1237_v3, %v1003_v27  ;;  %v4977_v3 = vpop.f32.mrf.mxu0 }
 0x1b8   : > { %v4965_v51 = vpop.f32.mrf.mxu1  ;;  %5659 = vst [vmem:[#allocation47_spill] sm:$0xff] %v4977_v3 }
 0x1b9   : > { %5656 = vst [vmem:[#allocation44_spill] sm:$0xff] %v4963_v20 }
 0x1ba   : > { %1465 = vmatmul.bf16.gmra.mxu3 %v4406_v10  ;;  %2810 = vmatmul.bf16.vlgmr.msra.gmra.mxu0 %v4431_v30  ;;  %v4059_v10 = vld [vmem:[%s5592_s3 + $0x1a8] sm:$0xff] }
 0x1bb   : > { %2054 = vmatmul.bf16.gmra.mxu1 %v4685_v38  ;;  %2265 = vmatmul.bf16.gmra.mxu2 %v4429_v29 }
 0x1bc   : > { %2505 = vmatpush.bf16.msra.mxu3 %v4059_v10 }
 0x1bd   : > { %v1006_v41 = vpop.f32.mrf.mxu3 }
 0x1be   : > { %v1240_v33 = vpop.f32.mrf.mxu2 }
 0x1bf   : > { %v4973_v19 = vadd.f32 %v1240_v33, %v1006_v41  ;;  %v4990_v41 = vpop.f32.mrf.mxu0 }
 0x1c0   : > { %v4975_v28 = vpop.f32.mrf.mxu1  ;;  %5661 = vst [vmem:[#allocation49_spill] sm:$0xff] %v4990_v41 }
 0x1c1   : > { %5658 = vst [vmem:[#allocation46_spill] sm:$0xff] %v4973_v19 }
 0x1c5   : > { %v1008_v27 = vpop.f32.mrf.mxu3 }
 0x1c6   : > { %v1242_v12 = vpop.f32.mrf.mxu2 }
 0x1c7   : > { %v4979_v20 = vadd.f32 %v1242_v12, %v1008_v27  ;;  %v5001_v16 = vpop.f32.mrf.mxu0 }
 0x1c8   : > { %v4981_v4 = vpop.f32.mrf.mxu1  ;;  %5664 = vst [vmem:[#allocation52_spill] sm:$0xff] %v5001_v16 }
 0x1c9   : > { %5660 = vst [vmem:[#allocation48_spill] sm:$0xff] %v4979_v20 }
 0x1ca   : > { %1470 = vmatmul.bf16.gmra.mxu3 %v4429_v29  ;;  %2815 = vmatmul.bf16.gmra.mxu0 %v4456_v52  ;;  %v4075_v52 = vld [vmem:[%s5592_s3 + $0x228] sm:$0xff] }
 0x1cb   : > { %2059 = vmatmul.bf16.gmra.mxu1 %v4721_v54  ;;  %2270 = vmatmul.bf16.gmra.mxu2 %v4454_v50 }
 0x1cc   : > { %3055 = vmatpush.bf16.msra.mxu1 %v4075_v52 }
 0x1cd   : > { %v1011_v30 = vpop.f32.mrf.mxu3 }
 0x1ce   : > { %v1245_v12 = vpop.f32.mrf.mxu2 }
 0x1cf   : > { %v4992_v33 = vadd.f32 %v1245_v12, %v1011_v30 }
 0x1d0   : > { %v4994_v27 = vpop.f32.mrf.mxu1 }
 0x1d1   : > { %5662 = vst [vmem:[#allocation50_spill] sm:$0xff] %v4992_v33 }
 0x1d5   : > { %v1013_v3 = vpop.f32.mrf.mxu3 }
 0x1d6   : > { %v1247_v20 = vpop.f32.mrf.mxu2 }
 0x1d7   : > { %v4999_v19 = vadd.f32 %v1247_v20, %v1013_v3  ;;  %v5013_v20 = vpop.f32.mrf.mxu0 }
 0x1d8   : > { %v5003_v7 = vpop.f32.mrf.mxu1  ;;  %5666 = vst [vmem:[#allocation54_spill] sm:$0xff] %v5013_v20 }
 0x1d9   : > { %5663 = vst [vmem:[#allocation51_spill] sm:$0xff] %v4999_v19 }
 0x1da   : > { %1475 = vmatmul.bf16.gmra.mxu3 %v4454_v50  ;;  %2820 = vmatmul.bf16.gmra.mxu0 %v4481_v15  ;;  %v4058_v15 = vld [vmem:[%s5592_s3 + $0x1a0] sm:$0xff] }
 0x1db   : > { %2064 = vmatmul.bf16.gmra.mxu1 %v4757_v63  ;;  %2275 = vmatmul.bf16.gmra.mxu2 %v4479_v14 }
 0x1dc   : > { %2506 = vmatpush.bf16.msra.mxu3 %v4058_v15  ;;  %v4073_v15 = vld [vmem:[%s5592_s3 + $0x218] sm:$0xff] }
 0x1dd   : > { %v1016_v10 = vpop.f32.mrf.mxu3 }
 0x1de   : > { %v1250_v30 = vpop.f32.mrf.mxu2 }
 0x1df   : > { %v5009_v12 = vadd.f32 %v1250_v30, %v1016_v10  ;;  %v5026_v10 = vpop.f32.mrf.mxu0 }
 0x1e0   : > { %v5011_v52 = vpop.f32.mrf.mxu1  ;;  %5669 = vst [vmem:[#allocation57_spill] sm:$0xff] %v5026_v10 }
 0x1e1   : > { %5665 = vst [vmem:[#allocation53_spill] sm:$0xff] %v5009_v12 }
 0x1e5   : > { %v1018_v3 = vpop.f32.mrf.mxu3 }
 0x1e6   : > { %v1252_v16 = vpop.f32.mrf.mxu2 }
 0x1e7   : > { %v5015_v41 = vadd.f32 %v1252_v16, %v1018_v3 }
 0x1e8   : > { %v5017_v19 = vpop.f32.mrf.mxu1 }
 0x1e9   : > { %5667 = vst [vmem:[#allocation55_spill] sm:$0xff] %v5015_v41  ;;  %v5035_v41 = vpop.f32.mrf.mxu0 }
 0x1ea   : > { %5668 = vst [vmem:[#allocation56_spill] sm:$0xff] %v5017_v19  ;;  %1480 = vmatmul.bf16.gmra.mxu3 %v4479_v14  ;;  %2825 = vmatmul.bf16.gmra.mxu0 %v4518_v46  ;;  %v4074_v46 = vld [vmem:[%s5592_s3 + $0x220] sm:$0xff] }
 0x1eb   : > { %2069 = vmatmul.bf16.gmra.mxu1 %v4805_v39  ;;  %2280 = vmatmul.bf16.gmra.mxu2 %v4516_v45  ;;  %5671 = vst [vmem:[#allocation59_spill] sm:$0xff] %v5035_v41 }
 0x1ec   : > { %3056 = vmatpush.bf16.msra.mxu1 %v4074_v46 }
 0x1ed   : > { %v1021_v30 = vpop.f32.mrf.mxu3 }
 0x1ee   : > { %v1255_v16 = vpop.f32.mrf.mxu2 }
 0x1ef   : > { %v5028_v3 = vadd.f32 %v1255_v16, %v1021_v30 }
 0x1f0   : > { %v5030_v20 = vpop.f32.mrf.mxu1  ;;  %3057 = vmatpush.bf16.msra.mxu1 %v4073_v15 }
 0x1f1   : > { %5670 = vst [vmem:[#allocation58_spill] sm:$0xff] %v5030_v20  ;;  %v5053_v46 = vpop.f32.mrf.mxu0 }
 0x1f2   : > { %5674 = vst [vmem:[#allocation62_spill] sm:$0xff] %v5053_v46 }
 0x1f5   : > { %v1023_v19 = vpop.f32.mrf.mxu3 }
 0x1f6   : > { %v1257_v12 = vpop.f32.mrf.mxu2 }
 0x1f7   : > { %v5037_v33 = vadd.f32 %v1257_v12, %v1023_v19  ;;  %v4072_v19 = vld [vmem:[%s5592_s3 + $0x210] sm:$0xff] }
 0x1f8   : > { %v5039_v47 = vpop.f32.mrf.mxu1  ;;  %3058 = vmatpush.bf16.msra.mxu1 %v4072_v19 }
 0x1f9   : > { %5672 = vst [vmem:[#allocation60_spill] sm:$0xff] %v5039_v47  ;;  %v4070_v47 = vld [vmem:[%s5592_s3 + $0x200] sm:$0xff] }
 0x1fa   : > { %1485 = vmatmul.bf16.gmra.mxu3 %v4516_v45  ;;  %2830 = vmatmul.bf16.gmra.mxu0 %v4555_v24  ;;  %v4071_v24 = vld [vmem:[%s5592_s3 + $0x208] sm:$0xff] }
 0x1fb   : > { %2074 = vmatmul.bf16.gmra.mxu1 %v4865_v31  ;;  %2285 = vmatmul.bf16.gmra.mxu2 %v4553_v23 }
 0x1fc   : > { %3059 = vmatpush.bf16.msra.mxu1 %v4071_v24 }
 0x1fd   : > { %v1026_v30 = vpop.f32.mrf.mxu3 }
 0x1fe   : > { %v1260_v16 = vpop.f32.mrf.mxu2 }
 0x1ff   : > { %v5051_v12 = vadd.f32 %v1260_v16, %v1026_v30  ;;  %v5065_v30 = vpop.f32.mrf.mxu0  ;;  %v4057_v16 = vld [vmem:[%s5592_s3 + $0x198] sm:$0xff] }
 0x200   : > { %v5058_v41 = vpop.f32.mrf.mxu1  ;;  %3060 = vmatpush.bf16.msra.mxu1 %v4070_v47  ;;  %5677 = vst [vmem:[#allocation65_spill] sm:$0xff] %v5065_v30  ;;  %2507 = vmatpush.bf16.msra.mxu3 %v4057_v16 }
 0x201   : > { %5673 = vst [vmem:[#allocation61_spill] sm:$0xff] %v5051_v12 }
 0x202   : > { %5675 = vst [vmem:[#allocation63_spill] sm:$0xff] %v5058_v41 }
 0x205   : > { %v1028_v10 = vpop.f32.mrf.mxu3 }
 0x206   : > { %v1262_v15 = vpop.f32.mrf.mxu2 }
 0x207   : > { %v5063_v20 = vadd.f32 %v1262_v15, %v1028_v10  ;;  %v5078_v15 = vpop.f32.mrf.mxu0 }
 0x208   : > { %v5074_v19 = vpop.f32.mrf.mxu1  ;;  %5680 = vst [vmem:[#allocation68_spill] sm:$0xff] %v5078_v15 }
 0x209   : > { %5676 = vst [vmem:[#allocation64_spill] sm:$0xff] %v5063_v20  ;;  %v5086_v20 = vpack.c.bf16 %v4920_v6, %v4918_v8 }
 0x20a   : > { %1490 = vmatmul.bf16.gmra.mxu3 %v4553_v23  ;;  %2835 = vmatmul.bf16.gmra.mxu0 %v4583_v1  ;;  %5678 = vst [vmem:[#allocation66_spill] sm:$0xff] %v5074_v19 }
 0x20b   : > { %2079 = vmatmul.bf16.gmra.mxu1 %v4914_v34  ;;  %2290 = vmatmul.bf16.gmra.mxu2 %v4581_v0 }
 0x20d   : > { %v1031_v10 = vpop.f32.mrf.mxu3 }
 0x20e   : > { %v1265_v24 = vpop.f32.mrf.mxu2 }
 0x20f   : > { %v5076_v47 = vadd.f32 %v1265_v24, %v1031_v10  ;;  %v5092_v10 = vpop.f32.mrf.mxu0 }
 0x210   : > { %v5080_v1 = vpop.f32.mrf.mxu1  ;;  %5683 = vst [vmem:[#allocation71_spill] sm:$0xff] %v5092_v10 }
 0x211   : > { %5679 = vst [vmem:[#allocation67_spill] sm:$0xff] %v5076_v47 }
 0x212   : > { %5681 = vst [vmem:[#allocation69_spill] sm:$0xff] %v5080_v1  ;;  %v809_v1 = vrot.slane %v4626_v56, 1  ;;  %v4056_v56 = vld [vmem:[%s5592_s3 + $0x190] sm:$0xff] }
 0x213   : > { %2508 = vmatpush.bf16.msra.mxu3 %v4056_v56 }
 0x215   : > { %v1033_v30 = vpop.f32.mrf.mxu3 }
 0x216   : > { %v1267_v46 = vpop.f32.mrf.mxu2 }
 0x217   : > { %v5082_v41 = vadd.f32 %v1267_v46, %v1033_v30  ;;  %v808_v30 = vrot.slane %v4624_v61, 1  ;;  %v5107_v10 = vpop.f32.mrf.mxu0 }
 0x218   : > { %v5096_v46 = vpop.f32.mrf.mxu1  ;;  %5685 = vst [vmem:[#allocation73_spill] sm:$0xff] %v5107_v10 }
 0x219   : > { %5682 = vst [vmem:[#allocation70_spill] sm:$0xff] %v5082_v41  ;;  %v853_v47 = vsel %vm835_vm0, %v808_v30, %v809_v1 }
 0x21a   : > { %1495 = vmatmul.bf16.gmra.mxu3 %v4581_v0  ;;  %2840 = vmatmul.bf16.gmra.mxu0 %v4615_v58  ;;  %5684 = vst [vmem:[#allocation72_spill] sm:$0xff] %v5096_v46  ;;  %v852_v58 = vsel %vm835_vm0, %v809_v1, %v4390_v62 }
 0x21b   : > { %2084 = vmatmul.bf16.gmra.mxu1 %v5086_v20  ;;  %2295 = vmatmul.bf16.gmra.mxu2 %v4609_v40 }
 0x21d   : > { %v1036_v16 = vpop.f32.mrf.mxu3 }
 0x21e   : > { %v1270_v24 = vpop.f32.mrf.mxu2 }
 0x21f   : > { %v5094_v15 = vadd.f32 %v1270_v24, %v1036_v16  ;;  %v5109_v16 = vpack.c.bf16 %v852_v58, %v853_v47  ;;  %v811_v24 = vrot.slane %v4658_v13, 1  ;;  %v5124_v30 = vpop.f32.mrf.mxu0 }
 0x220   : > { %v5113_v61 = vpop.f32.mrf.mxu1  ;;  %5687 = vst [vmem:[#allocation75_spill] sm:$0xff] %v5124_v30  ;;  %v5732_v30 = vld [vmem:[#allocation64_spill] sm:$0xff] }
 0x221   : > { %5686 = vst [vmem:[#allocation74_spill] sm:$0xff] %v5113_v61 }
 0x225   : > { %v1038_v19 = vpop.f32.mrf.mxu3 }
 0x226   : > { %v1272_v41 = vpop.f32.mrf.mxu2 }
 0x227   : > { %v5105_v12 = vadd.f32 %v1272_v41, %v1038_v19 }
 0x228   : > { %v5129_v10 = vpop.f32.mrf.mxu1 }
 0x22a   : > { %1500 = vmatmul.bf16.gmra.mxu3 %v4609_v40  ;;  %2845 = vmatmul.bf16.gmra.mxu0 %v4649_v36  ;;  %v812_v36 = vrot.slane %v4660_v22, 1 }
 0x22b   : > { %3061 = vmatmul.bf16.vlgmr.msra.gmra.mxu1 %v4429_v29  ;;  %2300 = vmatmul.bf16.gmra.mxu2 %v5109_v16 }
 0x22c   : > { %v851_v13 = vsel %vm835_vm0, %v811_v24, %v812_v36 }
 0x22d   : > { %v1461_v41 = vpop.f32.mrf.mxu3 }
 0x22e   : > { %v1573_v19 = vadd.f32 %v1461_v41, %v4628_v5  ;;  %v2261_v1 = vpop.f32.mrf.mxu2 }
 0x230   : > { %v1824_v47 = vadd.f32 %v4639_v26, %v1573_v19  ;;  %v850_v26 = vsel %vm835_vm0, %v812_v36, %v4390_v62 }
 0x231   : > { %v5138_v56 = vpack.c.bf16 %v850_v26, %v851_v13 }
 0x232   : > { %v2122_v29 = vadd.f32 %v4945_v57, %v1824_v47 }
 0x234   : > { %v5127_v58 = vadd.f32 %v2261_v1, %v2122_v29  ;;  %v814_v1 = vrot.slane %v4694_v32, 1 }
 0x235   : > { %v1463_v61 = vpop.f32.mrf.mxu3 }
 0x236   : > { %v1574_v46 = vadd.f32 %v1463_v61, %v4637_v18  ;;  %v2263_v5 = vpop.f32.mrf.mxu2  ;;  %v5145_v18 = vpop.f32.mrf.mxu0 }
 0x237   : > { %5688 = vst [vmem:[#allocation76_spill] sm:$0xff] %v5145_v18 }
 0x238   : > { %v1825_v22 = vadd.f32 %v4664_v60, %v1574_v46  ;;  %v5150_v46 = vpop.f32.mrf.mxu1 }
 0x23a   : > { %v2123_v57 = vadd.f32 %v4958_v43, %v1825_v22  ;;  %1505 = vmatmul.bf16.gmra.mxu3 %v5109_v16  ;;  %2850 = vmatmul.bf16.gmra.mxu0 %v4685_v38  ;;  %v815_v38 = vrot.slane %v4696_v42, 1 }
 0x23b   : > { %3066 = vmatmul.bf16.gmra.mxu1 %v4454_v50  ;;  %2305 = vmatmul.bf16.gmra.mxu2 %v5138_v56 }
 0x23c   : > { %v5147_v61 = vadd.f32 %v2263_v5, %v2123_v57 }
 0x23d   : > { %v1466_v41 = vpop.f32.mrf.mxu3 }
 0x23e   : > { %v1575_v19 = vadd.f32 %v1466_v41, %v4662_v48  ;;  %v2266_v60 = vpop.f32.mrf.mxu2  ;;  %v5158_v36 = vpop.f32.mrf.mxu0  ;;  %v848_v48 = vsel %vm835_vm0, %v815_v38, %v4390_v62 }
 0x23f   : > { %5689 = vst [vmem:[#allocation77_spill] sm:$0xff] %v5158_v36 }
 0x240   : > { %v1826_v43 = vadd.f32 %v4675_v25, %v1575_v19  ;;  %v849_v25 = vsel %vm835_vm0, %v814_v1, %v815_v38  ;;  %v5167_v42 = vpop.f32.mrf.mxu1 }
 0x242   : > { %v2124_v50 = vadd.f32 %v4965_v51, %v1826_v43  ;;  %v5169_v51 = vpack.c.bf16 %v848_v48, %v849_v25  ;;  %v5693_v25 = vld [vmem:[#allocation17_spill] sm:$0xff] }
 0x244   : > { %v5156_v47 = vadd.f32 %v2266_v60, %v2124_v50 }
 0x245   : > { %v1468_v24 = vpop.f32.mrf.mxu3 }
 0x246   : > { %v1576_v29 = vadd.f32 %v1468_v24, %v4673_v11  ;;  %v2268_v5 = vpop.f32.mrf.mxu2 }
 0x248   : > { %v1827_v32 = vadd.f32 %v4700_v9, %v1576_v29  ;;  %v4055_v9 = vld [vmem:[%s5592_s3 + $0x188] sm:$0xff]  ;;  %v5188_v60 = vpop.f32.mrf.mxu1 }
 0x249   : > { %2509 = vmatpush.bf16.msra.mxu3 %v4055_v9  ;;  %v821_v9 = vrot.slane %v4771_v21, 1 }
 0x24a   : > { %v2125_v26 = vadd.f32 %v4975_v28, %v1827_v32  ;;  %1510 = vmatmul.bf16.gmra.mxu3 %v5138_v56  ;;  %2855 = vmatmul.bf16.gmra.mxu0 %v4721_v54  ;;  %v5182_v28 = vpop.f32.mrf.mxu0  ;;  %v817_v54 = vrot.slane %v4730_v44, 1 }
 0x24b   : > { %3071 = vmatmul.bf16.gmra.mxu1 %v4479_v14  ;;  %2310 = vmatmul.bf16.gmra.mxu2 %v5169_v51  ;;  %5690 = vst [vmem:[#allocation78_spill] sm:$0xff] %v5182_v28  ;;  %v818_v14 = vrot.slane %v4732_v55, 1  ;;  %v5720_v28 = vld [vmem:[#allocation48_spill] sm:$0xff] }
 0x24c   : > { %v5176_v11 = vadd.f32 %v2268_v5, %v2125_v26 }
 0x24d   : > { %v1471_v13 = vpop.f32.mrf.mxu3 }
 0x24e   : > { %v1577_v22 = vadd.f32 %v1471_v13, %v4698_v2  ;;  %v2271_v57 = vpop.f32.mrf.mxu2  ;;  %v846_v2 = vsel %vm835_vm0, %v818_v14, %v4390_v62 }
 0x250   : > { %v1828_v41 = vadd.f32 %v4711_v17, %v1577_v22  ;;  %v847_v17 = vsel %vm835_vm0, %v817_v54, %v818_v14  ;;  %v5210_v29 = vpop.f32.mrf.mxu1  ;;  %v844_v54 = vsel %vm835_vm0, %v821_v9, %v4390_v62 }
 0x251   : > { %v5199_v55 = vpack.c.bf16 %v846_v2, %v847_v17  ;;  %v4054_v17 = vld [vmem:[%s5592_s3 + $0x180] sm:$0xff] }
 0x252   : > { %v2126_v19 = vadd.f32 %v4981_v4, %v1828_v41  ;;  %v5201_v4 = vpop.f32.mrf.mxu0  ;;  %2510 = vmatpush.bf16.msra.mxu3 %v4054_v17 }
 0x253   : > { %5691 = vst [vmem:[#allocation79_spill] sm:$0xff] %v5201_v4 }
 0x254   : > { %v5190_v43 = vadd.f32 %v2271_v57, %v2126_v19  ;;  %v5694_v57 = vld [vmem:[#allocation16_spill] sm:$0xff] }
 0x255   : > { %v1473_v1 = vpop.f32.mrf.mxu3 }
 0x256   : > { %v1578_v38 = vadd.f32 %v1473_v1, %v4709_v37  ;;  %v2273_v50 = vpop.f32.mrf.mxu2 }
 0x258   : > { %v1829_v44 = vadd.f32 %v4736_v53, %v1578_v38  ;;  %v5692_v53 = vld [vmem:[#allocation15_spill] sm:$0xff]  ;;  %v5227_v19 = vpop.f32.mrf.mxu1 }
 0x25a   : > { %v2127_v24 = vadd.f32 %v4994_v27, %v1829_v44  ;;  %1515 = vmatmul.bf16.gmra.mxu3 %v5169_v51  ;;  %2860 = vmatmul.bf16.gmra.mxu0 %v4757_v63  ;;  %v820_v27 = vrot.slane %v4769_v35, 1  ;;  %v5217_v13 = vpop.f32.mrf.mxu0  ;;  %v5695_v35 = vld [vmem:[#allocation20_spill] sm:$0xff] }
 0x25b   : > { %3076 = vmatmul.bf16.gmra.mxu1 %v4516_v45  ;;  %2315 = vmatmul.bf16.gmra.mxu2 %v5199_v55 }
 0x25c   : > { %v5208_v37 = vadd.f32 %v2273_v50, %v2127_v24  ;;  %v845_v14 = vsel %vm835_vm0, %v820_v27, %v821_v9  ;;  %v5696_v24 = vld [vmem:[#allocation19_spill] sm:$0xff] }
 0x25d   : > { %v1476_v5 = vpop.f32.mrf.mxu3  ;;  %v5230_v1 = vpack.c.bf16 %v844_v54, %v845_v14  ;;  %v5700_v54 = vld [vmem:[#allocation30_spill] sm:$0xff] }
 0x25e   : > { %v1579_v48 = vadd.f32 %v1476_v5, %v5692_v53  ;;  %v2276_v26 = vpop.f32.mrf.mxu2  ;;  %v826_v14 = vrot.slane %v5700_v54, 1 }
 0x260   : > { %v1830_v32 = vadd.f32 %v5693_v25, %v1579_v48  ;;  %v5247_v5 = vpop.f32.mrf.mxu1  ;;  %v5698_v25 = vld [vmem:[#allocation21_spill] sm:$0xff] }
 0x262   : > { %v2128_v63 = vadd.f32 %v5003_v7, %v1830_v32  ;;  %v5242_v44 = vpop.f32.mrf.mxu0 }
 0x264   : > { %v5219_v45 = vadd.f32 %v2276_v26, %v2128_v63 }
 0x265   : > { %v1478_v22 = vpop.f32.mrf.mxu3 }
 0x266   : > { %v1580_v41 = vadd.f32 %v1478_v22, %v5694_v57  ;;  %v2278_v38 = vpop.f32.mrf.mxu2  ;;  %v5699_v57 = vld [vmem:[#allocation25_spill] sm:$0xff] }
 0x268   : > { %v1831_v21 = vadd.f32 %v5695_v35, %v1580_v41  ;;  %v5701_v35 = vld [vmem:[#allocation31_spill] sm:$0xff] }
 0x26a   : > { %v2129_v7 = vadd.f32 %v5011_v52, %v1831_v21  ;;  %1520 = vmatmul.bf16.gmra.mxu3 %v5199_v55  ;;  %2865 = vmatmul.bf16.gmra.mxu0 %v4805_v39  ;;  %v823_v39 = vrot.slane %v4820_v49, 1  ;;  %v5259_v9 = vpop.f32.mrf.mxu0  ;;  %v5265_v49 = vpop.f32.mrf.mxu1  ;;  %v827_v21 = vrot.slane %v5701_v35, 1 }
 0x26b   : > { %3081 = vmatmul.bf16.gmra.mxu1 %v4553_v23  ;;  %2320 = vmatmul.bf16.gmra.mxu2 %v5230_v1  ;;  %v5697_v23 = vld [vmem:[#allocation24_spill] sm:$0xff] }
 0x26c   : > { %v5237_v2 = vadd.f32 %v2278_v38, %v2129_v7  ;;  %v824_v53 = vrot.slane %v5697_v23, 1 }
 0x26d   : > { %v1481_v50 = vpop.f32.mrf.mxu3 }
 0x26e   : > { %v5245_v52 = vadd.f32 %v1481_v50, %v5696_v24  ;;  %v842_v26 = vsel %vm835_vm0, %v824_v53, %v4390_v62  ;;  %v843_v27 = vsel %vm835_vm0, %v823_v39, %v824_v53  ;;  %v841_v24 = vsel %vm835_vm0, %v826_v14, %v827_v21 }
 0x26f   : > { %v5261_v63 = vpack.c.bf16 %v842_v26, %v843_v27  ;;  %v829_v27 = vrot.slane %v4918_v8, 1 }
 0x272   : > { %v5274_v7 = vpop.f32.mrf.mxu0  ;;  %v5276_v38 = vpop.f32.mrf.mxu1 }
 0x273   : > { %5702 = vst [vmem:[#allocation15_spill] sm:$0xff] %v5276_v38 }
 0x275   : > { %v1483_v48 = vpop.f32.mrf.mxu3 }
 0x276   : > { %v5252_v32 = vadd.f32 %v1483_v48, %v5698_v25  ;;  %v5704_v48 = vld [vmem:[#allocation32_spill] sm:$0xff] }
 0x27a   : > { %1525 = vmatmul.bf16.gmra.mxu3 %v5230_v1  ;;  %2870 = vmatmul.bf16.gmra.mxu0 %v4865_v31  ;;  %v5703_v31 = vld [vmem:[#allocation27_spill] sm:$0xff]  ;;  %v5292_v23 = vpop.f32.mrf.mxu0  ;;  %v5297_v26 = vpop.f32.mrf.mxu1 }
 0x27b   : > { %3086 = vmatmul.bf16.gmra.mxu1 %v4581_v0  ;;  %2325 = vmatmul.bf16.gmra.mxu2 %v5261_v63  ;;  %v840_v0 = vsel %vm835_vm0, %v827_v21, %v4390_v62  ;;  %5705 = vst [vmem:[#allocation17_spill] sm:$0xff] %v5297_v26 }
 0x27c   : > { %v5286_v39 = vpack.c.bf16 %v840_v0, %v841_v24  ;;  %v5710_v24 = vld [vmem:[#allocation41_spill] sm:$0xff] }
 0x27d   : > { %v1486_v22 = vpop.f32.mrf.mxu3 }
 0x27e   : > { %v5270_v41 = vadd.f32 %v1486_v22, %v5699_v57  ;;  %v830_v22 = vrot.slane %v4920_v6, 1  ;;  %v5708_v6 = vld [vmem:[#allocation37_spill] sm:$0xff] }
 0x280   : > { %v839_v35 = vsel %vm835_vm0, %v829_v27, %v830_v22  ;;  %v5711_v27 = vld [vmem:[#allocation5_spill] sm:$0xff] }
 0x282   : > { %v5301_v54 = vpop.f32.mrf.mxu0  ;;  %v5311_v21 = vpop.f32.mrf.mxu1 }
 0x283   : > { %5707 = vst [vmem:[#allocation16_spill] sm:$0xff] %v5311_v21 }
 0x285   : > { %v1488_v17 = vpop.f32.mrf.mxu3 }
 0x286   : > { %v5279_v50 = vadd.f32 %v1488_v17, %v5703_v31 }
 0x28a   : > { %1530 = vmatmul.bf16.gmra.mxu3 %v5261_v63  ;;  %2875 = vmatmul.bf16.gmra.mxu0 %v4914_v34  ;;  %v5706_v34 = vld [vmem:[#allocation34_spill] sm:$0xff]  ;;  %v5319_v0 = vpop.f32.mrf.mxu0 }
 0x28b   : > { %3091 = vmatmul.bf16.gmra.mxu1 %v4609_v40  ;;  %2330 = vmatmul.bf16.gmra.mxu2 %v5286_v39  ;;  %v838_v40 = vsel %vm835_vm0, %v830_v22, %v4390_v62  ;;  %v5321_v62 = vpop.f32.mrf.mxu1 }
 0x28c   : > { %v2186_v17 = vpack.c.bf16 %v838_v40, %v839_v35  ;;  %5709 = vst [vmem:[#allocation20_spill] sm:$0xff] %v5321_v62  ;;  %v5715_v35 = vld [vmem:[#allocation44_spill] sm:$0xff] }
 0x28d   : > { %v1491_v53 = vpop.f32.mrf.mxu3 }
 0x28e   : > { %v5295_v25 = vadd.f32 %v1491_v53, %v5704_v48 }
 0x292   : > { %v5326_v48 = vpop.f32.mrf.mxu0 }
 0x295   : > { %v1493_v57 = vpop.f32.mrf.mxu3 }
 0x296   : > { %v5304_v14 = vadd.f32 %v1493_v57, %v5706_v34  ;;  %v5714_v57 = vld [vmem:[#allocation42_spill] sm:$0xff] }
 0x29a   : > { %1535 = vmatmul.bf16.gmra.mxu3 %v5286_v39  ;;  %2880 = vmatmul.bf16.gmra.mxu0 %v5086_v20  ;;  %v5712_v20 = vmov 0.0|0.0  }
 0x29b   : > { %3096 = vmatmul.bf16.gmra.mxu1 %v5109_v16  ;;  %2335 = vmatmul.bf16.gmra.mxu2 %v2186_v17  ;;  %v5331_v16 = vpop.f32.mrf.mxu1 }
 0x29c   : > { %5713 = vst [vmem:[#allocation19_spill] sm:$0xff] %v5331_v16 }
 0x29d   : > { %v1496_v8 = vpop.f32.mrf.mxu3 }
 0x29e   : > { %v5317_v31 = vadd.f32 %v1496_v8, %v5708_v6 }
 0x2a3   : > { %v5339_v6 = vpop.f32.mrf.mxu1 }
 0x2a4   : > { %5716 = vst [vmem:[#allocation24_spill] sm:$0xff] %v5339_v6 }
 0x2a5   : > { %v1498_v59 = vpop.f32.mrf.mxu3 }
 0x2a6   : > { %v5324_v53 = vadd.f32 %v1498_v59, %v5710_v24  ;;  %v5717_v59 = vld [vmem:[#allocation6_spill] sm:$0xff] }
 0x2aa   : > { %2511 = vmatmul.bf16.vlgmr.msra.gmra.mxu3 %v5711_v27  ;;  %2885 = vmatmul.bf16.gmra.mxu0 %v5712_v20  ;;  %v5718_v27 = vld [vmem:[#allocation46_spill] sm:$0xff] }
 0x2ab   : > { %3101 = vmatmul.bf16.gmra.mxu1 %v5138_v56  ;;  %v5346_v56 = vpop.f32.mrf.mxu1 }
 0x2ac   : > { %5719 = vst [vmem:[#allocation21_spill] sm:$0xff] %v5346_v56  ;;  %v5725_v56 = vld [vmem:[#allocation8_spill] sm:$0xff] }
 0x2ad   : > { %v1501_v22 = vpop.f32.mrf.mxu3 }
 0x2ae   : > { %v5334_v34 = vadd.f32 %v1501_v22, %v5714_v57  ;;  %v5721_v57 = vld [vmem:[#allocation7_spill] sm:$0xff] }
 0x2b5   : > { %v1503_v40 = vpop.f32.mrf.mxu3 }
 0x2b6   : > { %v5337_v8 = vadd.f32 %v1503_v40, %v5715_v35  ;;  %v5352_v40 = vpop.f32.mrf.mxu1 }
 0x2b7   : > { %5722 = vst [vmem:[#allocation25_spill] sm:$0xff] %v5352_v40 }
 0x2ba   : > { %2516 = vmatmul.bf16.gmra.mxu3 %v5717_v59  ;;  %v5723_v59 = vld [vmem:[#allocation50_spill] sm:$0xff] }
 0x2bb   : > { %3106 = vmatmul.bf16.gmra.mxu1 %v5169_v51 }
 0x2bd   : > { %v1506_v24 = vpop.f32.mrf.mxu3 }
 0x2be   : > { %v5344_v20 = vadd.f32 %v1506_v24, %v5718_v27  ;;  %v3062_v51 = vpop.f32.mrf.mxu1  ;;  %v5724_v24 = vld [vmem:[#allocation51_spill] sm:$0xff] }
 0x2c5   : > { %v1508_v4 = vpop.f32.mrf.mxu3 }
 0x2c6   : > { %v5349_v22 = vadd.f32 %v1508_v4, %v5720_v28  ;;  %v5726_v4 = vld [vmem:[#allocation53_spill] sm:$0xff]  ;;  %v3064_v40 = vpop.f32.mrf.mxu1 }
 0x2ca   : > { %2521 = vmatmul.bf16.gmra.mxu3 %v5721_v57 }
 0x2cb   : > { %3111 = vmatmul.bf16.gmra.mxu1 %v5199_v55  ;;  %v5727_v55 = vld [vmem:[#allocation55_spill] sm:$0xff] }
 0x2cd   : > { %v1511_v35 = vpop.f32.mrf.mxu3 }
 0x2ce   : > { %v5356_v6 = vadd.f32 %v1511_v35, %v5723_v59  ;;  %v3067_v35 = vpop.f32.mrf.mxu1  ;;  %v5728_v59 = vld [vmem:[#allocation9_spill] sm:$0xff] }
 0x2d5   : > { %v1513_v36 = vpop.f32.mrf.mxu3 }
 0x2d6   : > { %v5359_v27 = vadd.f32 %v1513_v36, %v5724_v24 }
 0x2da   : > { %2526 = vmatmul.bf16.gmra.mxu3 %v5725_v56  ;;  %v3069_v56 = vpop.f32.mrf.mxu1 }
 0x2db   : > { %3116 = vmatmul.bf16.gmra.mxu1 %v5230_v1 }
 0x2dd   : > { %v1516_v28 = vpop.f32.mrf.mxu3 }
 0x2de   : > { %v5364_v57 = vadd.f32 %v1516_v28, %v5726_v4  ;;  %v5730_v28 = vld [vmem:[#allocation10_spill] sm:$0xff] }
 0x2e5   : > { %v1518_v16 = vpop.f32.mrf.mxu3 }
 0x2e6   : > { %v5367_v18 = vadd.f32 %v1518_v16, %v5727_v55  ;;  %v5379_v16 = vpop.f32.mrf.mxu1  ;;  %v5731_v55 = vld [vmem:[#allocation61_spill] sm:$0xff] }
 0x2ea   : > { %2531 = vmatmul.bf16.gmra.mxu3 %v5728_v59 }
 0x2eb   : > { %3121 = vmatmul.bf16.gmra.mxu1 %v5261_v63 }
 0x2ed   : > { %v1521_v36 = vpop.f32.mrf.mxu3 }
 0x2ee   : > { %v5372_v24 = vadd.f32 %v1521_v36, %v5028_v3  ;;  %v5387_v3 = vpop.f32.mrf.mxu1  ;;  %v5733_v36 = vld [vmem:[#allocation11_spill] sm:$0xff] }
 0x2f5   : > { %v1523_v1 = vpop.f32.mrf.mxu3 }
 0x2f6   : > { %v5375_v62 = vadd.f32 %v1523_v1, %v5037_v33  ;;  %v5734_v1 = vld [vmem:[#allocation67_spill] sm:$0xff] }
 0x2f8   : > { %5729 = vst [vmem:[#allocation30_spill] sm:$0xff] %v5375_v62  ;;  %v5736_v62 = vld [vmem:[#allocation70_spill] sm:$0xff] }
 0x2fa   : > { %2536 = vmatmul.bf16.gmra.mxu3 %v5730_v28 }
 0x2fb   : > { %3126 = vmatmul.bf16.gmra.mxu1 %v5286_v39  ;;  %v5393_v39 = vpop.f32.mrf.mxu1 }
 0x2fd   : > { %v1526_v4 = vpop.f32.mrf.mxu3 }
 0x2fe   : > { %v5382_v59 = vadd.f32 %v1526_v4, %v5731_v55  ;;  %v5738_v4 = vld [vmem:[#allocation12_spill] sm:$0xff] }
 0x303   : > { %v5399_v55 = vpop.f32.mrf.mxu1 }
 0x305   : > { %v1528_v63 = vpop.f32.mrf.mxu3 }
 0x306   : > { %v5385_v21 = vadd.f32 %v1528_v63, %v5732_v30  ;;  %v5739_v30 = vld [vmem:[#allocation39_spill] sm:$0xff] }
 0x30a   : > { %2541 = vmatmul.bf16.gmra.mxu3 %v5733_v36 }
 0x30b   : > { %3131 = vmatmul.bf16.gmra.mxu1 %v2186_v17 }
 0x30d   : > { %v1531_v33 = vpop.f32.mrf.mxu3 }
 0x30e   : > { %v5391_v28 = vadd.f32 %v1531_v33, %v5734_v1  ;;  %v5741_v1 = vld [vmem:[#allocation13_spill] sm:$0xff] }
 0x310   : > { %5735 = vst [vmem:[#allocation31_spill] sm:$0xff] %v5391_v28 }
 0x315   : > { %v1533_v26 = vpop.f32.mrf.mxu3 }
 0x316   : > { %v5396_v38 = vadd.f32 %v1533_v26, %v5736_v62 }
 0x318   : > { %5737 = vst [vmem:[#allocation27_spill] sm:$0xff] %v5396_v38 }
 0x31a   : > { %2546 = vmatmul.bf16.gmra.mxu3 %v5738_v4 }
 0x31b   : > { %3136 = vmatmul.bf16.gmra.mxu1 %v5739_v30  ;;  %v5414_v30 = vld [vmem:[%s5593_s4] ss:$0 sm:$0xff] }
 0x31d   : > { %v1536_v63 = vpop.f32.mrf.mxu3 }
 0x31e   : > { %v5403_v36 = vadd.f32 %v1536_v63, %v5094_v15 }
 0x325   : > { %v1538_v17 = vpop.f32.mrf.mxu3 }
 0x326   : > { %v5406_v33 = vadd.f32 %v1538_v17, %v5105_v12 }
 0x328   : > { %5740 = vst [vmem:[#allocation32_spill] sm:$0xff] %v5406_v33 }
 0x32a   : > { %2551 = vmatmul.bf16.gmra.mxu3 %v5741_v1  ;;  %v5742_v1 = vld [vmem:[#allocation14_spill] sm:$0xff] }
 0x32d   : > { %v2512_v28 = vpop.f32.mrf.mxu3 }
 0x32e   : > { %v2624_v26 = vadd.f32 %v2512_v28, %v5127_v58  ;;  %v2281_v28 = vpop.f32.mrf.mxu2 }
 0x330   : > { %v2923_v62 = vadd.f32 %v5217_v13, %v2624_v26 }
 0x332   : > { %v3174_v38 = vadd.f32 %v3062_v51, %v2923_v62 }
 0x334   : > { %v3274_v63 = vadd.f32 %v5414_v30, %v3174_v38  ;;  %v5431_v38 = vpop.f32.mrf.mxu0 }
 0x335   : > { %v2514_v4 = vpop.f32.mrf.mxu3 }
 0x336   : > { %v2625_v15 = vadd.f32 %v2514_v4, %v5147_v61  ;;  %v3306_v26 = vmax.f32 %v3274_v63, 0.0 }
 0x338   : > { %v2924_v12 = vadd.f32 %v5242_v44, %v2625_v15 }
 0x33a   : > { %v3175_v17 = vadd.f32 %v3064_v40, %v2924_v12  ;;  %2556 = vmatmul.bf16.gmra.mxu3 %v5742_v1  ;;  %v5433_v40 = vpop.f32.mrf.mxu1  ;;  %v2283_v12 = vpop.f32.mrf.mxu2 }
 0x33c   : > { %v3275_v58 = vadd.f32 %v5414_v30, %v3175_v17 }
 0x33d   : > { %v2517_v13 = vpop.f32.mrf.mxu3 }
 0x33e   : > { %v3307_v51 = vmax.f32 %v3275_v58, 0.0  ;;  %v2626_v62 = vadd.f32 %v2517_v13, %v5156_v47  ;;  %v5743_v58 = vld [vmem:[#allocation18_spill] sm:$0xff] }
 0x340   : > { %v4081_v61 = vpack.c.bf16 %v3307_v51, %v3306_v26  ;;  %v2925_v44 = vadd.f32 %v5259_v9, %v2626_v62  ;;  %v2833_v9 = vpop.f32.mrf.mxu0 }
 0x342   : > { %4082 = vst [vmem:[%s5427_s12] sm:$0xff] %v4081_v61   ;;  %v3176_v15 = vadd.f32 %v3067_v35, %v2925_v44  ;;  %v3084_v35 = vpop.f32.mrf.mxu1  ;;  %v2286_v33 = vpop.f32.mrf.mxu2 }
 0x344   : > { %v3276_v17 = vadd.f32 %v5414_v30, %v3176_v15 }
 0x345   : > { %v2519_v4 = vpop.f32.mrf.mxu3 }
 0x346   : > { %v2627_v47 = vadd.f32 %v2519_v4, %v5176_v11  ;;  %v3308_v51 = vmax.f32 %v3276_v17, 0.0 }
 0x348   : > { %v2926_v63 = vadd.f32 %v5274_v7, %v2627_v47  ;;  %v5445_v15 = vpop.f32.mrf.mxu0 }
 0x34a   : > { %v3177_v1 = vadd.f32 %v3069_v56, %v2926_v63  ;;  %2561 = vmatmul.bf16.gmra.mxu3 %v5743_v58  ;;  %v5448_v63 = vpop.f32.mrf.mxu1  ;;  %v2288_v58 = vpop.f32.mrf.mxu2 }
 0x34c   : > { %v3277_v13 = vadd.f32 %v5414_v30, %v3177_v1  ;;  %v5744_v1 = vld [vmem:[#allocation23_spill] sm:$0xff] }
 0x34d   : > { %v2522_v26 = vpop.f32.mrf.mxu3 }
 0x34e   : > { %v3309_v62 = vmax.f32 %v3277_v13, 0.0  ;;  %v2628_v61 = vadd.f32 %v2522_v26, %v5190_v43 }
 0x350   : > { %v4086_v44 = vpack.c.bf16 %v3309_v62, %v3308_v51  ;;  %v2927_v11 = vadd.f32 %v5292_v23, %v2628_v61  ;;  %v2838_v62 = vpop.f32.mrf.mxu0 }
 0x352   : > { %4158 = vst [vmem:[%s5427_s12 + $0x8] sm:$0xff] %v4086_v44   ;;  %v3178_v4 = vadd.f32 %v5379_v16, %v2927_v11  ;;  %v3089_v61 = vpop.f32.mrf.mxu1  ;;  %v5745_v44 = vld [vmem:[#allocation22_spill] sm:$0xff] }
 0x353   : > { %v1832_v11 = vadd.f32 %v5745_v44, %v5245_v52  ;;  %v5749_v44 = vld [vmem:[#allocation58_spill] sm:$0xff] }
 0x354   : > { %v3278_v43 = vadd.f32 %v5414_v30, %v3178_v4 }
 0x355   : > { %v2524_v7 = vpop.f32.mrf.mxu3 }
 0x356   : > { %v2629_v56 = vadd.f32 %v2524_v7, %v5208_v37  ;;  %v3310_v16 = vmax.f32 %v3278_v43, 0.0 }
 0x358   : > { %v2928_v47 = vadd.f32 %v5301_v54, %v2629_v56 }
 0x35a   : > { %v3179_v17 = vadd.f32 %v5387_v3, %v2928_v47  ;;  %2566 = vmatmul.bf16.gmra.mxu3 %v5744_v1  ;;  %v2291_v3 = vpop.f32.mrf.mxu2  ;;  %v5746_v47 = vld [vmem:[#allocation56_spill] sm:$0xff] }
 0x35b   : > { %v2130_v43 = vadd.f32 %v5746_v47, %v1832_v11 }
 0x35c   : > { %v3279_v23 = vadd.f32 %v5414_v30, %v3179_v17 }
 0x35d   : > { %v2527_v13 = vpop.f32.mrf.mxu3  ;;  %v2381_v52 = vadd.f32 %v2281_v28, %v2130_v43  ;;  %v5750_v28 = vld [vmem:[#allocation28_spill] sm:$0xff] }
 0x35e   : > { %v3311_v26 = vmax.f32 %v3279_v23, 0.0  ;;  %v2630_v37 = vadd.f32 %v2527_v13, %v5219_v45  ;;  %v5466_v23 = vpop.f32.mrf.mxu0  ;;  %v5748_v13 = vld [vmem:[#allocation26_spill] sm:$0xff] }
 0x360   : > { %v4091_v51 = vpack.c.bf16 %v3311_v26, %v3310_v16  ;;  %v2929_v54 = vadd.f32 %v5319_v0, %v2630_v37  ;;  %v5747_v0 = vld [vmem:[#allocation29_spill] sm:$0xff]  ;;  %v1833_v16 = vadd.f32 %v5748_v13, %v5252_v32 }
 0x362   : > { %4159 = vst [vmem:[%s5427_s12 + $0x10] sm:$0xff] %v4091_v51   ;;  %v3180_v4 = vadd.f32 %v5393_v39, %v2929_v54  ;;  %v2293_v54 = vpop.f32.mrf.mxu2  ;;  %v2131_v11 = vadd.f32 %v5749_v44, %v1833_v16 }
 0x364   : > { %v3280_v45 = vadd.f32 %v5414_v30, %v3180_v4  ;;  %v2382_v4 = vadd.f32 %v2283_v12, %v2131_v11  ;;  %v5753_v12 = vld [vmem:[#allocation33_spill] sm:$0xff] }
 0x365   : > { %v2529_v7 = vpop.f32.mrf.mxu3 }
 0x366   : > { %v2631_v56 = vadd.f32 %v2529_v7, %v5237_v2  ;;  %v5471_v2 = vpop.f32.mrf.mxu1  ;;  %v3312_v37 = vmax.f32 %v3280_v45, 0.0  ;;  %v2843_v32 = vpop.f32.mrf.mxu0  ;;  %v5751_v45 = vld [vmem:[#allocation60_spill] sm:$0xff] }
 0x368   : > { %v2930_v17 = vadd.f32 %v5326_v48, %v2631_v56  ;;  %v1834_v56 = vadd.f32 %v5750_v28, %v5270_v41  ;;  %v1835_v41 = vadd.f32 %v5753_v12, %v5279_v50 }
 0x36a   : > { %v3181_v1 = vadd.f32 %v5399_v55, %v2930_v17  ;;  %2571 = vmatmul.bf16.gmra.mxu3 %v5747_v0  ;;  %v2132_v0 = vadd.f32 %v5751_v45, %v1834_v56  ;;  %v2296_v13 = vpop.f32.mrf.mxu2  ;;  %v5756_v45 = vld [vmem:[#allocation66_spill] sm:$0xff] }
 0x36c   : > { %v3281_v39 = vadd.f32 %v5414_v30, %v3181_v1 }
 0x36d   : > { %v2532_v26 = vpop.f32.mrf.mxu3 }
 0x36e   : > { %v3313_v48 = vmax.f32 %v3281_v39, 0.0  ;;  %v2632_v51 = vadd.f32 %v2532_v26, %v2381_v52  ;;  %v3094_v1 = vpop.f32.mrf.mxu1  ;;  %v5752_v26 = vld [vmem:[#allocation35_spill] sm:$0xff]  ;;  %v2846_v11 = vpop.f32.mrf.mxu0 }
 0x370   : > { %v4096_v55 = vpack.c.bf16 %v3313_v48, %v3312_v37  ;;  %v2931_v7 = vadd.f32 %v5431_v38, %v2632_v51  ;;  %v2383_v38 = vadd.f32 %v2286_v33, %v2132_v0  ;;  %v5755_v33 = vld [vmem:[#allocation36_spill] sm:$0xff] }
 0x372   : > { %4160 = vst [vmem:[%s5427_s12 + $0x18] sm:$0xff] %v4096_v55   ;;  %v3182_v43 = vadd.f32 %v5433_v40, %v2931_v7  ;;  %v5754_v55 = vld [vmem:[#allocation63_spill] sm:$0xff]  ;;  %v2298_v28 = vpop.f32.mrf.mxu2 }
 0x374   : > { %v3282_v16 = vadd.f32 %v5414_v30, %v3182_v43 }
 0x375   : > { %v2534_v47 = vpop.f32.mrf.mxu3 }
 0x376   : > { %v2633_v17 = vadd.f32 %v2534_v47, %v2382_v4  ;;  %v3314_v40 = vmax.f32 %v3282_v16, 0.0  ;;  %v3097_v4 = vpop.f32.mrf.mxu1  ;;  %v1836_v47 = vadd.f32 %v5755_v33, %v5295_v25  ;;  %v2848_v16 = vpop.f32.mrf.mxu0 }
 0x378   : > { %v2932_v52 = vadd.f32 %v2833_v9, %v2633_v17  ;;  %v2133_v9 = vadd.f32 %v5754_v55, %v1835_v41  ;;  %v2134_v0 = vadd.f32 %v5756_v45, %v1836_v47 }
 0x37a   : > { %v3183_v39 = vadd.f32 %v3084_v35, %v2932_v52  ;;  %2576 = vmatmul.bf16.gmra.mxu3 %v5752_v26  ;;  %v2384_v56 = vadd.f32 %v2288_v58, %v2133_v9  ;;  %v2385_v12 = vadd.f32 %v2291_v3, %v2134_v0  ;;  %v5758_v58 = vld [vmem:[#allocation38_spill] sm:$0xff]  ;;  %v5760_v3 = vld [vmem:[#allocation43_spill] sm:$0xff] }
 0x37b   : > { %v1837_v41 = vadd.f32 %v5758_v58, %v5304_v14 }
 0x37c   : > { %v3283_v37 = vadd.f32 %v5414_v30, %v3183_v39 }
 0x37d   : > { %v2537_v48 = vpop.f32.mrf.mxu3 }
 0x37e   : > { %v3315_v51 = vmax.f32 %v3283_v37, 0.0  ;;  %v2634_v44 = vadd.f32 %v2537_v48, %v2383_v38  ;;  %v5757_v38 = vld [vmem:[#allocation40_spill] sm:$0xff]  ;;  %v2301_v37 = vpop.f32.mrf.mxu2  ;;  %v2851_v9 = vpop.f32.mrf.mxu0 }
 0x380   : > { %v4101_v7 = vpack.c.bf16 %v3315_v51, %v3314_v40  ;;  %v2933_v35 = vadd.f32 %v5445_v15, %v2634_v44  ;;  %v3099_v15 = vpop.f32.mrf.mxu1 }
 0x382   : > { %4161 = vst [vmem:[%s5427_s12 + $0x20] sm:$0xff] %v4101_v7   ;;  %v3184_v43 = vadd.f32 %v5448_v63, %v2933_v35  ;;  %v1838_v35 = vadd.f32 %v5760_v3, %v5317_v31 }
 0x384   : > { %v3284_v39 = vadd.f32 %v5414_v30, %v3184_v43  ;;  %v5761_v43 = vld [vmem:[#allocation72_spill] sm:$0xff] }
 0x385   : > { %v2539_v50 = vpop.f32.mrf.mxu3 }
 0x386   : > { %v2635_v17 = vadd.f32 %v2539_v50, %v2384_v56  ;;  %v3316_v48 = vmax.f32 %v3284_v39, 0.0  ;;  %v2303_v50 = vpop.f32.mrf.mxu2  ;;  %v5762_v39 = vld [vmem:[#allocation4_spill] sm:$0xff] }
 0x388   : > { %v2934_v52 = vadd.f32 %v2838_v62, %v2635_v17  ;;  %v5759_v62 = vld [vmem:[#allocation69_spill] sm:$0xff]  ;;  %v3102_v56 = vpop.f32.mrf.mxu1  ;;  %v2136_v17 = vadd.f32 %v5761_v43, %v1838_v35 }
 0x389   : > { %v2135_v44 = vadd.f32 %v5759_v62, %v1837_v41 }
 0x38a   : > { %v3185_v26 = vadd.f32 %v3089_v61, %v2934_v52  ;;  %2581 = vmatmul.bf16.gmra.mxu3 %v5757_v38  ;;  %v2853_v38 = vpop.f32.mrf.mxu0 }
 0x38b   : > { %v2386_v7 = vadd.f32 %v2293_v54, %v2135_v44  ;;  %v5763_v54 = vld [vmem:[#allocation45_spill] sm:$0xff] }
 0x38c   : > { %v3285_v25 = vadd.f32 %v5414_v30, %v3185_v26  ;;  %v1839_v26 = vadd.f32 %v5763_v54, %v5324_v53 }
 0x38d   : > { %v2542_v63 = vpop.f32.mrf.mxu3 }
 0x38e   : > { %v3317_v40 = vmax.f32 %v3285_v25, 0.0  ;;  %v2636_v51 = vadd.f32 %v2542_v63, %v2385_v12  ;;  %v5764_v63 = vld [vmem:[#allocation74_spill] sm:$0xff] }
 0x390   : > { %v4106_v55 = vpack.c.bf16 %v3317_v40, %v3316_v48  ;;  %v2935_v61 = vadd.f32 %v5466_v23, %v2636_v51  ;;  %v2387_v23 = vadd.f32 %v2296_v13, %v2136_v17  ;;  %v3104_v25 = vpop.f32.mrf.mxu1  ;;  %v2306_v40 = vpop.f32.mrf.mxu2  ;;  %v5765_v13 = vld [vmem:[#allocation47_spill] sm:$0xff] }
 0x391   : > { %v1840_v62 = vadd.f32 %v5765_v13, %v5334_v34 }
 0x392   : > { %4162 = vst [vmem:[%s5427_s12 + $0x28] sm:$0xff] %v4106_v55   ;;  %v3186_v33 = vadd.f32 %v5471_v2, %v2935_v61  ;;  %v2856_v61 = vpop.f32.mrf.mxu0 }
 0x394   : > { %v3286_v0 = vadd.f32 %v5414_v30, %v3186_v33 }
 0x395   : > { %v2544_v14 = vpop.f32.mrf.mxu3 }
 0x396   : > { %v2637_v47 = vadd.f32 %v2544_v14, %v2386_v7  ;;  %v3318_v2 = vmax.f32 %v3286_v0, 0.0  ;;  %v2138_v7 = vadd.f32 %v5129_v10, %v1840_v62 }
 0x398   : > { %v2936_v45 = vadd.f32 %v2843_v32, %v2637_v47  ;;  %v2137_v32 = vadd.f32 %v5764_v63, %v1839_v26  ;;  %v3107_v35 = vpop.f32.mrf.mxu1  ;;  %v2308_v47 = vpop.f32.mrf.mxu2  ;;  %v2389_v43 = vadd.f32 %v2301_v37, %v2138_v7 }
 0x39a   : > { %v3187_v52 = vadd.f32 %v3094_v1, %v2936_v45  ;;  %2586 = vmatmul.bf16.gmra.mxu3 %v5762_v39  ;;  %v2388_v51 = vadd.f32 %v2298_v28, %v2137_v32  ;;  %v2858_v39 = vpop.f32.mrf.mxu0 }
 0x39c   : > { %v3287_v31 = vadd.f32 %v5414_v30, %v3187_v52 }
 0x39d   : > { %v2547_v12 = vpop.f32.mrf.mxu3 }
 0x39e   : > { %v3319_v58 = vmax.f32 %v3287_v31, 0.0  ;;  %v2638_v41 = vadd.f32 %v2547_v12, %v2387_v23 }
 0x3a0   : > { %v4111_v48 = vpack.c.bf16 %v3319_v58, %v3318_v2  ;;  %v2937_v1 = vadd.f32 %v2846_v11, %v2638_v41  ;;  %v5766_v11 = vld [vmem:[#allocation49_spill] sm:$0xff]  ;;  %v3109_v23 = vpop.f32.mrf.mxu1  ;;  %v2311_v26 = vpop.f32.mrf.mxu2 }
 0x3a1   : > { %v1841_v28 = vadd.f32 %v5766_v11, %v5337_v8 }
 0x3a2   : > { %4163 = vst [vmem:[%s5427_s12 + $0x30] sm:$0xff] %v4111_v48   ;;  %v3188_v53 = vadd.f32 %v3097_v4, %v2937_v1  ;;  %v2861_v63 = vpop.f32.mrf.mxu0 }
 0x3a3   : > { %v2139_v52 = vadd.f32 %v5150_v46, %v1841_v28 }
 0x3a4   : > { %v3288_v14 = vadd.f32 %v5414_v30, %v3188_v53 }
 0x3a5   : > { %v2549_v44 = vpop.f32.mrf.mxu3  ;;  %v2390_v54 = vadd.f32 %v2303_v50, %v2139_v52 }
 0x3a6   : > { %v2639_v55 = vadd.f32 %v2549_v44, %v2388_v51  ;;  %v3320_v45 = vmax.f32 %v3288_v14, 0.0 }
 0x3a8   : > { %v2938_v3 = vadd.f32 %v2848_v16, %v2639_v55  ;;  %v3112_v1 = vpop.f32.mrf.mxu1  ;;  %v2313_v62 = vpop.f32.mrf.mxu2 }
 0x3aa   : > { %v3189_v33 = vadd.f32 %v3099_v15, %v2938_v3  ;;  %v5767_v15 = vld [vmem:[#allocation52_spill] sm:$0xff]  ;;  %v2863_v55 = vpop.f32.mrf.mxu0 }
 0x3ab   : > { %v1842_v37 = vadd.f32 %v5767_v15, %v5344_v20 }
 0x3ac   : > { %v3289_v17 = vadd.f32 %v5414_v30, %v3189_v33 }
 0x3ad   : > { %v2552_v34 = vpop.f32.mrf.mxu3  ;;  %v2140_v2 = vadd.f32 %v5167_v42, %v1842_v37 }
 0x3ae   : > { %v3321_v4 = vmax.f32 %v3289_v17, 0.0  ;;  %v2640_v0 = vadd.f32 %v2552_v34, %v2389_v43 }
 0x3af   : > { %v2391_v32 = vadd.f32 %v2306_v40, %v2140_v2 }
 0x3b0   : > { %v4116_v10 = vpack.c.bf16 %v3321_v4, %v3320_v45  ;;  %v2939_v16 = vadd.f32 %v2851_v9, %v2640_v0  ;;  %v5768_v9 = vld [vmem:[#allocation54_spill] sm:$0xff]  ;;  %v3114_v14 = vpop.f32.mrf.mxu1  ;;  %v2316_v11 = vpop.f32.mrf.mxu2 }
 0x3b1   : > { %v1843_v48 = vadd.f32 %v5768_v9, %v5349_v22 }
 0x3b2   : > { %4164 = vst [vmem:[%s5427_s12 + $0x38] sm:$0xff] %v4116_v10   ;;  %v3190_v8 = vadd.f32 %v3102_v56, %v2939_v16  ;;  %v2866_v0 = vpop.f32.mrf.mxu0 }
 0x3b3   : > { %v2141_v42 = vadd.f32 %v5188_v60, %v1843_v48 }
 0x3b4   : > { %v3290_v41 = vadd.f32 %v5414_v30, %v3190_v8 }
 0x3b5   : > { %v2554_v31 = vpop.f32.mrf.mxu3  ;;  %v2392_v53 = vadd.f32 %v2308_v47, %v2141_v42 }
 0x3b6   : > { %v2641_v12 = vadd.f32 %v2554_v31, %v2390_v54  ;;  %v3322_v51 = vmax.f32 %v3290_v41, 0.0 }
 0x3b8   : > { %v2940_v58 = vadd.f32 %v2853_v38, %v2641_v12  ;;  %v3117_v10 = vpop.f32.mrf.mxu1  ;;  %v2318_v16 = vpop.f32.mrf.mxu2 }
 0x3ba   : > { %v3191_v46 = vadd.f32 %v3104_v25, %v2940_v58  ;;  %v5769_v25 = vld [vmem:[#allocation57_spill] sm:$0xff]  ;;  %v2868_v12 = vpop.f32.mrf.mxu0 }
 0x3bb   : > { %v1844_v40 = vadd.f32 %v5769_v25, %v5356_v6 }
 0x3bc   : > { %v3291_v50 = vadd.f32 %v5414_v30, %v3191_v46  ;;  %v5772_v46 = vld [vmem:[#allocation65_spill] sm:$0xff] }
 0x3bd   : > { %v2557_v20 = vpop.f32.mrf.mxu3  ;;  %v2142_v33 = vadd.f32 %v5210_v29, %v1844_v40  ;;  %v5774_v40 = vld [vmem:[#allocation15_spill] sm:$0xff] }
 0x3be   : > { %v3323_v13 = vmax.f32 %v3291_v50, 0.0  ;;  %v2642_v56 = vadd.f32 %v2557_v20, %v2391_v32 }
 0x3bf   : > { %v2393_v17 = vadd.f32 %v2311_v26, %v2142_v33  ;;  %v5776_v33 = vld [vmem:[#allocation71_spill] sm:$0xff] }
 0x3c0   : > { %v4121_v44 = vpack.c.bf16 %v3323_v13, %v3322_v51  ;;  %v2941_v38 = vadd.f32 %v2856_v61, %v2642_v56  ;;  %v5770_v61 = vld [vmem:[#allocation59_spill] sm:$0xff]  ;;  %v3119_v58 = vpop.f32.mrf.mxu1  ;;  %v2321_v9 = vpop.f32.mrf.mxu2 }
 0x3c1   : > { %v1845_v47 = vadd.f32 %v5770_v61, %v5359_v27 }
 0x3c2   : > { %4165 = vst [vmem:[%s5427_s12 + $0x40] sm:$0xff] %v4121_v44   ;;  %v3192_v22 = vadd.f32 %v3107_v35, %v2941_v38  ;;  %v2871_v13 = vpop.f32.mrf.mxu0 }
 0x3c3   : > { %v2143_v52 = vadd.f32 %v5227_v19, %v1845_v47 }
 0x3c4   : > { %v3292_v28 = vadd.f32 %v5414_v30, %v3192_v22 }
 0x3c5   : > { %v2559_v7 = vpop.f32.mrf.mxu3  ;;  %v2394_v54 = vadd.f32 %v2313_v62, %v2143_v52  ;;  %v5773_v62 = vld [vmem:[#allocation68_spill] sm:$0xff]  ;;  %v5778_v52 = vld [vmem:[#allocation73_spill] sm:$0xff] }
 0x3c6   : > { %v2643_v3 = vadd.f32 %v2559_v7, %v2392_v53  ;;  %v3324_v45 = vmax.f32 %v3292_v28, 0.0  ;;  %v1848_v42 = vadd.f32 %v5773_v62, %v5372_v24 }
 0x3c8   : > { %v2942_v43 = vadd.f32 %v2858_v39, %v2643_v3  ;;  %v3122_v44 = vpop.f32.mrf.mxu1  ;;  %v2323_v25 = vpop.f32.mrf.mxu2 }
 0x3ca   : > { %v3193_v60 = vadd.f32 %v3109_v23, %v2942_v43  ;;  %v5771_v23 = vld [vmem:[#allocation62_spill] sm:$0xff]  ;;  %v2873_v28 = vpop.f32.mrf.mxu0 }
 0x3cb   : > { %v1846_v15 = vadd.f32 %v5771_v23, %v5364_v57  ;;  %v5779_v23 = vld [vmem:[#allocation16_spill] sm:$0xff] }
 0x3cc   : > { %v3293_v34 = vadd.f32 %v5414_v30, %v3193_v60 }
 0x3cd   : > { %v2562_v6 = vpop.f32.mrf.mxu3  ;;  %v2144_v31 = vadd.f32 %v5247_v5, %v1846_v15 }
 0x3ce   : > { %v3325_v4 = vmax.f32 %v3293_v34, 0.0  ;;  %v2644_v35 = vadd.f32 %v2562_v6, %v2393_v17  ;;  %v5777_v34 = vld [vmem:[#allocation17_spill] sm:$0xff] }
 0x3cf   : > { %v2395_v41 = vadd.f32 %v2316_v11, %v2144_v31 }
 0x3d0   : > { %v4126_v29 = vpack.c.bf16 %v3325_v4, %v3324_v45  ;;  %v2943_v39 = vadd.f32 %v2861_v63, %v2644_v35  ;;  %v1847_v63 = vadd.f32 %v5772_v46, %v5367_v18  ;;  %v3124_v47 = vpop.f32.mrf.mxu1  ;;  %v2326_v4 = vpop.f32.mrf.mxu2 }
 0x3d2   : > { %4166 = vst [vmem:[%s5427_s12 + $0x48] sm:$0xff] %v4126_v29   ;;  %v3194_v27 = vadd.f32 %v3112_v1, %v2943_v39  ;;  %v2145_v5 = vadd.f32 %v5265_v49, %v1847_v63  ;;  %v1850_v29 = vadd.f32 %v5778_v52, %v5382_v59 }
 0x3d4   : > { %v3294_v2 = vadd.f32 %v5414_v30, %v3194_v27  ;;  %v2396_v56 = vadd.f32 %v2318_v16, %v2145_v5  ;;  %v2148_v15 = vadd.f32 %v5779_v23, %v1850_v29 }
 0x3d5   : > { %v2564_v37 = vpop.f32.mrf.mxu3 }
 0x3d6   : > { %v2645_v26 = vadd.f32 %v2564_v37, %v2394_v54  ;;  %v3326_v48 = vmax.f32 %v3294_v2, 0.0  ;;  %v2876_v54 = vpop.f32.mrf.mxu0  ;;  %v5780_v2 = vld [vmem:[#allocation75_spill] sm:$0xff] }
 0x3d8   : > { %v2944_v8 = vadd.f32 %v2863_v55, %v2645_v26  ;;  %v2146_v55 = vadd.f32 %v5774_v40, %v1848_v42  ;;  %v3127_v27 = vpop.f32.mrf.mxu1 }
 0x3da   : > { %v3195_v19 = vadd.f32 %v3114_v14, %v2944_v8  ;;  %v2397_v3 = vadd.f32 %v2321_v9, %v2146_v55  ;;  %v5775_v14 = vld [vmem:[#allocation30_spill] sm:$0xff]  ;;  %v2328_v8 = vpop.f32.mrf.mxu2 }
 0x3db   : > { %v1849_v43 = vadd.f32 %v5776_v33, %v5775_v14 }
 0x3dc   : > { %v3295_v32 = vadd.f32 %v5414_v30, %v3195_v19  ;;  %v1851_v19 = vadd.f32 %v5780_v2, %v5385_v21 }
 0x3dd   : > { %v2567_v57 = vpop.f32.mrf.mxu3  ;;  %v2147_v6 = vadd.f32 %v5777_v34, %v1849_v43 }
 0x3de   : > { %v3327_v50 = vmax.f32 %v3295_v32, 0.0  ;;  %v2646_v1 = vadd.f32 %v2567_v57, %v2395_v41  ;;  %v5781_v32 = vld [vmem:[#allocation20_spill] sm:$0xff] }
 0x3df   : > { %v2149_v9 = vadd.f32 %v5781_v32, %v1851_v19 }
 0x3e0   : > { %v4131_v20 = vpack.c.bf16 %v3327_v50, %v3326_v48  ;;  %v2945_v51 = vadd.f32 %v2866_v0, %v2646_v1  ;;  %v2398_v0 = vadd.f32 %v2323_v25, %v2147_v6  ;;  %v2878_v48 = vpop.f32.mrf.mxu0  ;;  %v3129_v1 = vpop.f32.mrf.mxu1  ;;  %v5788_v6 = vld [vmem:[#allocation78_spill] sm:$0xff] }
 0x3e1   : > { %v2400_v5 = vadd.f32 %v2328_v8, %v2149_v9 }
 0x3e2   : > { %4167 = vst [vmem:[%s5427_s12 + $0x50] sm:$0xff] %v4131_v20   ;;  %v3196_v18 = vadd.f32 %v3117_v10, %v2945_v51  ;;  %v5782_v20 = vld [vmem:[#allocation31_spill] sm:$0xff]  ;;  %v5783_v51 = vld [vmem:[#allocation76_spill] sm:$0xff] }
 0x3e4   : > { %v3296_v22 = vadd.f32 %v5414_v30, %v3196_v18 }
 0x3e5   : > { %v2569_v38 = vpop.f32.mrf.mxu3 }
 0x3e6   : > { %v2647_v53 = vadd.f32 %v2569_v38, %v2396_v56  ;;  %v3328_v60 = vmax.f32 %v3296_v22, 0.0  ;;  %v2331_v56 = vpop.f32.mrf.mxu2  ;;  %v5786_v22 = vld [vmem:[#allocation77_spill] sm:$0xff] }
 0x3e8   : > { %v2946_v7 = vadd.f32 %v2868_v12, %v2647_v53  ;;  %v2399_v12 = vadd.f32 %v2326_v4, %v2148_v15  ;;  %v2881_v40 = vpop.f32.mrf.mxu0  ;;  %v3132_v14 = vpop.f32.mrf.mxu1 }
 0x3ea   : > { %v3197_v49 = vadd.f32 %v3119_v58, %v2946_v7  ;;  %v5785_v7 = vld [vmem:[#allocation27_spill] sm:$0xff] }
 0x3ec   : > { %v3297_v11 = vadd.f32 %v5414_v30, %v3197_v49  ;;  %v1853_v49 = vadd.f32 %v5786_v22, %v5785_v7 }
 0x3ed   : > { %v2572_v24 = vpop.f32.mrf.mxu3 }
 0x3ee   : > { %v3329_v17 = vmax.f32 %v3297_v11, 0.0  ;;  %v2648_v61 = vadd.f32 %v2572_v24, %v2397_v3  ;;  %v2333_v24 = vpop.f32.mrf.mxu2 }
 0x3f0   : > { %v4136_v45 = vpack.c.bf16 %v3329_v17, %v3328_v60  ;;  %v2947_v35 = vadd.f32 %v2871_v13, %v2648_v61  ;;  %v1852_v13 = vadd.f32 %v5783_v51, %v5782_v20  ;;  %v5787_v60 = vld [vmem:[#allocation24_spill] sm:$0xff]  ;;  %v2883_v4 = vpop.f32.mrf.mxu0  ;;  %v3134_v29 = vpop.f32.mrf.mxu1 }
 0x3f1   : > { %v2151_v17 = vadd.f32 %v5787_v60, %v1853_v49 }
 0x3f2   : > { %4168 = vst [vmem:[%s5427_s12 + $0x58] sm:$0xff] %v4136_v45   ;;  %v3198_v39 = vadd.f32 %v3122_v44, %v2947_v35  ;;  %v5784_v44 = vld [vmem:[#allocation19_spill] sm:$0xff]  ;;  %v1854_v45 = vadd.f32 %v5788_v6, %v5403_v36 }
 0x3f3   : > { %v2150_v38 = vadd.f32 %v5784_v44, %v1852_v13  ;;  %v2402_v34 = vadd.f32 %v2333_v24, %v2151_v17 }
 0x3f4   : > { %v3298_v26 = vadd.f32 %v5414_v30, %v3198_v39 }
 0x3f5   : > { %v2574_v10 = vpop.f32.mrf.mxu3  ;;  %v2401_v55 = vadd.f32 %v2331_v56, %v2150_v38 }
 0x3f6   : > { %v2649_v16 = vadd.f32 %v2574_v10, %v2398_v0  ;;  %v3330_v41 = vmax.f32 %v3298_v26, 0.0  ;;  %v5789_v10 = vld [vmem:[#allocation21_spill] sm:$0xff]  ;;  %v5791_v26 = vld [vmem:[#allocation79_spill] sm:$0xff] }
 0x3f7   : > { %v2152_v39 = vadd.f32 %v5789_v10, %v1854_v45 }
 0x3f8   : > { %v2948_v37 = vadd.f32 %v2873_v28, %v2649_v16  ;;  %v2886_v36 = vpop.f32.mrf.mxu0 }
 0x3fa   : > { %v3199_v31 = vadd.f32 %v3124_v47, %v2948_v37 }
 0x3fc   : > { %v3299_v58 = vadd.f32 %v5414_v30, %v3199_v31 }
 0x3fd   : > { %v2577_v59 = vpop.f32.mrf.mxu3 }
 0x3fe   : > { %v3331_v46 = vmax.f32 %v3299_v58, 0.0  ;;  %v2650_v63 = vadd.f32 %v2577_v59, %v2399_v12  ;;  %v3137_v59 = vpop.f32.mrf.mxu1 }
 0x400   : > { %v4141_v57 = vpack.c.bf16 %v3331_v46, %v3330_v41  ;;  %v2949_v50 = vadd.f32 %v2876_v54, %v2650_v63  ;;  %v2336_v54 = vpop.f32.mrf.mxu2  ;;  %v5792_v41 = vld [vmem:[#allocation25_spill] sm:$0xff] }
 0x401   : > { %v2403_v37 = vadd.f32 %v2336_v54, %v2152_v39 }
 0x402   : > { %4169 = vst [vmem:[%s5427_s12 + $0x60] sm:$0xff] %v4141_v57   ;;  %v3200_v21 = vadd.f32 %v3127_v27, %v2949_v50  ;;  %v5790_v27 = vld [vmem:[#allocation32_spill] sm:$0xff] }
 0x403   : > { %v1855_v31 = vadd.f32 %v5791_v26, %v5790_v27 }
 0x404   : > { %v3300_v53 = vadd.f32 %v5414_v30, %v3200_v21 }
 0x405   : > { %v2579_v62 = vpop.f32.mrf.mxu3  ;;  %v2153_v46 = vadd.f32 %v5792_v41, %v1855_v31 }
 0x406   : > { %v2651_v42 = vadd.f32 %v2579_v62, %v2400_v5  ;;  %v3332_v43 = vmax.f32 %v3300_v53, 0.0  ;;  %v2888_v5 = vpop.f32.mrf.mxu0  ;;  %v3139_v51 = vpop.f32.mrf.mxu1 }
 0x408   : > { %v2950_v18 = vadd.f32 %v2878_v48, %v2651_v42  ;;  %v2338_v9 = vpop.f32.mrf.mxu2 }
 0x409   : > { %v2404_v57 = vadd.f32 %v2338_v9, %v2153_v46 }
 0x40a   : > { %v3201_v25 = vadd.f32 %v3129_v1, %v2950_v18 }
 0x40c   : > { %v3301_v3 = vadd.f32 %v5414_v30, %v3201_v25 }
 0x40d   : > { %v2582_v33 = vpop.f32.mrf.mxu3 }
 0x40e   : > { %v3333_v11 = vmax.f32 %v3301_v3, 0.0  ;;  %v2652_v28 = vadd.f32 %v2582_v33, %v2401_v55 }
 0x410   : > { %v4146_v61 = vpack.c.bf16 %v3333_v11, %v3332_v43  ;;  %v2951_v47 = vadd.f32 %v2881_v40, %v2652_v28 }
 0x412   : > { %4170 = vst [vmem:[%s5427_s12 + $0x68] sm:$0xff] %v4146_v61   ;;  %v3202_v0 = vadd.f32 %v3132_v14, %v2951_v47 }
 0x414   : > { %v3302_v23 = vadd.f32 %v5414_v30, %v3202_v0 }
 0x415   : > { %v2584_v35 = vpop.f32.mrf.mxu3 }
 0x416   : > { %v2653_v52 = vadd.f32 %v2584_v35, %v2402_v34  ;;  %v3334_v2 = vmax.f32 %v3302_v23, 0.0 }
 0x418   : > { %v2952_v16 = vadd.f32 %v2883_v4, %v2653_v52 }
 0x41a   : > { %v3203_v15 = vadd.f32 %v3134_v29, %v2952_v16 }
 0x41c   : > { %v3303_v8 = vadd.f32 %v5414_v30, %v3203_v15 }
 0x41d   : > { %v2587_v12 = vpop.f32.mrf.mxu3 }
 0x41e   : > { %v3335_v19 = vmax.f32 %v3303_v8, 0.0  ;;  %v2654_v58 = vadd.f32 %v2587_v12, %v2403_v37 }
 0x420   : > { %v4151_v63 = vpack.c.bf16 %v3335_v19, %v3334_v2  ;;  %v2953_v32 = vadd.f32 %v2886_v36, %v2654_v58 }
 0x422   : > { %4171 = vst [vmem:[%s5427_s12 + $0x70] sm:$0xff] %v4151_v63   ;;  %v3204_v50 = vadd.f32 %v3137_v59, %v2953_v32 }
 0x424   : > { %v3304_v13 = vadd.f32 %v5414_v30, %v3204_v50 }
 0x425   : > { %v2589_v48 = vpop.f32.mrf.mxu3 }
 0x426   : > { %v2655_v1 = vadd.f32 %v2589_v48, %v2404_v57  ;;  %v3336_v21 = vmax.f32 %v3304_v13, 0.0 }
 0x428   : > { %v2954_v20 = vadd.f32 %v2888_v5, %v2655_v1 }
 0x42a   : > { %v3205_v56 = vadd.f32 %v3139_v51, %v2954_v20 }
 0x42c   : > { %v3305_v62 = vadd.f32 %v5414_v30, %v3205_v56 }
 0x42e   : > { %v3337_v42 = vmax.f32 %v3305_v62, 0.0 }
 0x430   : > { %v4156_v44 = vpack.c.bf16 %v3337_v42, %v3336_v21 }
 0x432   : > { %4172 = vst [vmem:[%s5427_s12 + $0x78] sm:$0xff] %v4156_v44  }
 0x433 PF: > { %s15_s18 = sadd.s32 1, %s4207_s18  }
 0x434   : > { %p12_p4 = scmp.ge.s32.totalorder %s15_s18, 4  }
 0x436   :  { %14 = sbr.rel (!%p12_p4) target bundleno = 1 (0x1), region = 81 }

</bundles_post_ra>
